<compile_context>
chip_gen: v5e
topology: v5e:2x2
jax: 0.10.0
libtpu: 0.0.40
codegen_flags: <defaults>
</compile_context>

<pallas_src>
import jax
import jax.numpy as jnp
from jax.experimental import pallas as pl
from jax.experimental.pallas import tpu as pltpu

C_OUT = 10
KH = KW = 3


def _round_up(a, b):
    return (a + b - 1) // b * b


# ----------------------------------------------------------------------------
# Kernel 1: 3x3 valid conv (1 -> 10 channels) fused with ReLU, bf16 output.
# ----------------------------------------------------------------------------
def conv_relu_kernel(x_ref, w_ref, b_ref, o_ref):
    # x_ref : (1, H, W) f32           VMEM
    # w_ref : (C_OUT*KH*KW,) f32      SMEM (flattened conv weights, scalar reads)
    # b_ref : (C_OUT,) f32            SMEM
    # o_ref : (1, C_OUT, Ho, Wo) bf16 VMEM (Wo == 128 -> unmasked lane-dense vst)
    Ho, Wo = o_ref.shape[2], o_ref.shape[3]
    # Hoist the 9 shifted windows once; reuse across all 10 output channels.
    windows = [
        x_ref[0, kh:kh + Ho, kw:kw + Wo]
        for kh in range(KH) for kw in range(KW)
    ]
    for co in range(C_OUT):
        acc = jnp.full((Ho, Wo), b_ref[co], dtype=jnp.float32)
        for t in range(KH * KW):
            acc = acc + windows[t] * w_ref[co * KH * KW + t]
        o_ref[0, co] = jnp.maximum(acc, 0.0).astype(o_ref.dtype)


def conv_relu(x, w, b):
    # x: (N, H, W) f32, w: (C_OUT, KH, KW) f32, b: (C_OUT,) f32 -> (N,10,Ho,Wo) bf16
    N, H, W = x.shape
    Ho, Wo = H - KH + 1, W - KW + 1
    return pl.pallas_call(
        conv_relu_kernel,
        out_shape=jax.ShapeDtypeStruct((N, C_OUT, Ho, Wo), jnp.bfloat16),
        grid_spec=pltpu.PrefetchScalarGridSpec(
            num_scalar_prefetch=0,
            grid=(N,),
            in_specs=[
                pl.BlockSpec((1, H, W), lambda n: (n, 0, 0)),
                pl.BlockSpec(memory_space=pltpu.MemorySpace.SMEM),
                pl.BlockSpec(memory_space=pltpu.MemorySpace.SMEM),
            ],
            out_specs=pl.BlockSpec((1, C_OUT, Ho, Wo), lambda n: (n, 0, 0, 0)),
        ),
        compiler_params=pltpu.CompilerParams(
            dimension_semantics=("parallel",)),
    )(x, w.reshape(-1), b)


# ----------------------------------------------------------------------------
# One-time weight preparation (hoisted out of the forward path):
#   pad to MXU/lane-friendly sizes and cast to bf16 once at "model init".
# ----------------------------------------------------------------------------
def prepare_mlp_params(w1, b1, w2, b2, w3, b3, *, tk):
    F, H1 = w1.shape
    H2, H3 = w2.shape[1], w3.shape[1]
    FP = _round_up(F, tk)
    H1P = _round_up(H1, 128)
    H2P = _round_up(H2, 128)
    H3P = _round_up(H3, 128)
    return dict(
        tk=tk, F=F, FP=FP, H1=H1, H1P=H1P, H2=H2, H2P=H2P, H3=H3, H3P=H3P,
        w1=jnp.pad(w1, ((0, FP - F), (0, H1P - H1))).astype(jnp.bfloat16),
        b1=jnp.pad(b1, (0, H1P - H1)).reshape(1, H1P).astype(jnp.float32),
        w2=jnp.pad(w2, ((0, H1P - H1), (0, H2P - H2))).astype(jnp.bfloat16),
        b2=jnp.pad(b2, (0, H2P - H2)).reshape(1, H2P).astype(jnp.float32),
        w3=jnp.pad(w3, ((0, H2P - H2), (0, H3P - H3))).astype(jnp.bfloat16),
        b3=jnp.pad(b3, (0, H3P - H3)).reshape(1, H3P).astype(jnp.float32),
    )


# ----------------------------------------------------------------------------
# Kernel 2: layer 1 (Linear(F, 500) + ReLU), K-tiled w1 stream.
#   Grid = (H1 column blocks [parallel], F tiles [arbitrary]).
#   Each column block owns its own f32 accumulator; on v7x the column blocks
#   shard across the two TensorCores.
# ----------------------------------------------------------------------------
def layer1_kernel(x_ref, w1_ref, b1_ref, h1_ref, acc_ref):
    k = pl.program_id(1)

    @pl.when(k == 0)
    def _():
        acc_ref[...] = jnp.zeros_like(acc_ref)

    # bf16 x bf16 -> f32 accumulate on the MXU.
    acc_ref[...] += jnp.dot(x_ref[...], w1_ref[...],
                            preferred_element_type=jnp.float32)

    @pl.when(k == pl.num_programs(1) - 1)
    def _():
        h1_ref[...] = jnp.maximum(acc_ref[...] + b1_ref[...],
                                  0.0).astype(h1_ref.dtype)


# ----------------------------------------------------------------------------
# Kernel 3: tiny head, Linear(500,100)+ReLU then Linear(100,6); fully resident.
# ----------------------------------------------------------------------------
def head_kernel(h1_ref, w2_ref, b2_ref, w3_ref, b3_ref, o_ref):
    h2 = jnp.maximum(
        jnp.dot(h1_ref[...], w2_ref[...],
                preferred_element_type=jnp.float32) + b2_ref[...], 0.0)
    o_ref[...] = (jnp.dot(h2.astype(jnp.bfloat16), w3_ref[...],
                          preferred_element_type=jnp.float32) + b3_ref[...])


def mlp(h, p, *, th1=256):
    # h: (N, F) bf16 activation (from the conv, already bf16); p: prepared params.
    N, F = h.shape
    tk, FP, H1P, H2P, H3P = p["tk"], p["FP"], p["H1P"], p["H2P"], p["H3P"]

    # Batch padded to 16 (bf16 (16,128) sublane packing); F padded to tk multiple.
    NP = _round_up(max(N, 16), 16)
    hp = jnp.pad(h, ((0, NP - N), (0, FP - F)))

    kt = FP // tk
    jt = H1P // th1

    h1 = pl.pallas_call(
        layer1_kernel,
        out_shape=jax.ShapeDtypeStruct((NP, H1P), jnp.bfloat16),
        grid_spec=pltpu.PrefetchScalarGridSpec(
            num_scalar_prefetch=0,
            grid=(jt, kt),
            in_specs=[
                pl.BlockSpec((NP, tk), lambda j, k: (0, k)),     # x tile (stream)
                pl.BlockSpec((tk, th1), lambda j, k: (k, j)),    # w1 tile (stream)
                pl.BlockSpec((1, th1), lambda j, k: (0, j)),     # b1 slice
            ],
            out_specs=pl.BlockSpec((NP, th1), lambda j, k: (0, j)),
            scratch_shapes=[pltpu.VMEM((NP, th1), jnp.float32)],
        ),
        compiler_params=pltpu.CompilerParams(
            dimension_semantics=("parallel", "arbitrary")),
    )(hp, p["w1"], p["b1"])

    out = pl.pallas_call(
        head_kernel,
        out_shape=jax.ShapeDtypeStruct((NP, H3P), jnp.float32),
        grid_spec=pltpu.PrefetchScalarGridSpec(
            num_scalar_prefetch=0,
            grid=(1,),
            in_specs=[
                pl.BlockSpec((NP, H1P), lambda i: (0, 0)),
                pl.BlockSpec((H1P, H2P), lambda i: (0, 0)),
                pl.BlockSpec((1, H2P), lambda i: (0, 0)),
                pl.BlockSpec((H2P, H3P), lambda i: (0, 0)),
                pl.BlockSpec((1, H3P), lambda i: (0, 0)),
            ],
            out_specs=pl.BlockSpec((NP, H3P), lambda i: (0, 0)),
        ),
        compiler_params=pltpu.CompilerParams(
            dimension_semantics=("arbitrary",)),
    )(h1, p["w2"], p["b2"], p["w3"], p["b3"])

    return out[:N, :p["H3"]]


# ----------------------------------------------------------------------------
# Full forward (glue in plain JAX: channel squeeze + free contiguous flatten).
# ----------------------------------------------------------------------------
def model2_forward(x_nchw, conv_params, mlp_prepped):
    wc, bc = conv_params
    x = x_nchw[:, 0]                         # (N, H, W), single input channel
    h = conv_relu(x, wc, bc)                 # (N, 10, Ho, Wo) bf16, ReLU fused
    h = h.reshape(h.shape[0], -1)            # channel-major flatten (== torch)
    return mlp(h, mlp_prepped)               # (N, 6) f32


# ----------------------------------------------------------------------------
# Plain-JAX reference.  The Pallas MLP uses bf16 weights/activations with f32
# MXU accumulation; the reference applies the same quantization.  Conv is f32.
# ----------------------------------------------------------------------------
def reference(x_nchw, wc, bc, w1, b1, w2, b2, w3, b3):
    x = x_nchw[:, 0]
    N, H, W = x.shape
    Ho, Wo = H - KH + 1, W - KW + 1
    out = jnp.zeros((N, C_OUT, Ho, Wo), jnp.float32)
    for co in range(C_OUT):
        acc = jnp.full((N, Ho, Wo), bc[co])
        for kh in range(KH):
            for kw in range(KW):
                acc = acc + x[:, kh:kh + Ho, kw:kw + Wo] * wc[co, kh, kw]
        out = out.at[:, co].set(acc)
    h = jnp.maximum(out, 0.0).astype(jnp.bfloat16).reshape(N, -1)

    bf = lambda a: a.astype(jnp.bfloat16)
    hi = jax.lax.Precision.HIGHEST
    h1 = jnp.maximum(jnp.dot(h, bf(w1), precision=hi,
                             preferred_element_type=jnp.float32) + b1, 0.0)
    h2 = jnp.maximum(jnp.dot(bf(h1), bf(w2), precision=hi,
                             preferred_element_type=jnp.float32) + b2, 0.0)
    return jnp.dot(bf(h2), bf(w3), precision=hi,
                   preferred_element_type=jnp.float32) + b3


if __name__ == "__main__":
    key = jax.random.PRNGKey(0)
    ks = jax.random.split(key, 9)

    # Small, shape-consistent instance (module hard-codes 645x410 -> F=2.62M).
    # 10x130 input keeps the conv output plane (8, 128) lane-dense.
    N = 2
    H_IN, W_IN = 10, 130
    HO, WO = H_IN - KH + 1, W_IN - KW + 1      # (8, 128)
    F = C_OUT * HO * WO                        # 10240
    H1, H2, H3 = 500, 100, 6

    # K-tile: 2048 for the toy F=10240 (5 steps).  For the real F~=2.6M use
    # tk=4096 on v5e (16 MiB default scoped VMEM), tk=8192 on v6e/v7x.
    TK = 2048

    x = jax.random.normal(ks[0], (N, 1, H_IN, W_IN), jnp.float32)

    wc = jax.random.normal(ks[1], (C_OUT, KH, KW), jnp.float32) * (1.0 / 3.0)
    bc = jax.random.normal(ks[2], (C_OUT,), jnp.float32) * 0.1
    w1 = jax.random.normal(ks[3], (F, H1), jnp.float32) * (F ** -0.5)
    b1 = jax.random.normal(ks[4], (H1,), jnp.float32) * 0.1
    w2 = jax.random.normal(ks[5], (H1, H2), jnp.float32) * (H1 ** -0.5)
    b2 = jax.random.normal(ks[6], (H2,), jnp.float32) * 0.1
    w3 = jax.random.normal(ks[7], (H2, H3), jnp.float32) * (H2 ** -0.5)
    b3 = jax.random.normal(ks[8], (H3,), jnp.float32) * 0.1

    # Weights padded/cast ONCE (not per forward call).
    mlp_prepped = jax.tree_util.tree_map(
        jax.block_until_ready,
        prepare_mlp_params(w1, b1, w2, b2, w3, b3, tk=TK))

    out = jax.block_until_ready(model2_forward(x, (wc, bc), mlp_prepped))
    assert out.shape == (N, H3) and out.dtype == jnp.float32

    ref = jax.block_until_ready(reference(x, wc, bc, w1, b1, w2, b2, w3, b3))
    err = jnp.max(jnp.abs(out - ref))
    assert jnp.allclose(out, ref, rtol=2e-2, atol=2e-2), (
        f"mismatch: max abs err {err}")

    print("KERNEL_OK")
</pallas_src>

<mosaic_0001>
module attributes {stable_mosaic.version = 11 : i64} {
  func.func @conv_relu_kernel(%arg0: i32, %arg1: memref<1x10x130xf32, #tpu.memory_space<vmem>>, %arg2: memref<90xf32, #tpu.memory_space<smem>>, %arg3: memref<10xf32, #tpu.memory_space<smem>>, %arg4: memref<1x10x8x128xbf16, #tpu.memory_space<vmem>>) attributes {dimension_semantics = [#tpu.dimension_semantics<parallel>], iteration_bounds = array<i64: 2>, scalar_prefetch = 0 : i64, scratch_operands = 0 : i64, tpu.core_type = #tpu.core_type<tc>, window_params = [{transform_indices = @transform_0, window_bounds = array<i64: 1, 10, 130>}, {transform_indices = @transform_1, window_bounds = array<i64: 90>}, {transform_indices = @transform_2, window_bounds = array<i64: 10>}, {transform_indices = @transform_3, window_bounds = array<i64: 1, 10, 8, 128>}]} {
    %c0 = arith.constant 0 : index
    %c0_0 = arith.constant 0 : index
    %c0_1 = arith.constant 0 : index
    %0 = vector.load %arg1[%c0, %c0_0, %c0_1] : memref<1x10x130xf32, #tpu.memory_space<vmem>>, vector<1x8x128xf32>
    %1 = vector.shape_cast %0 : vector<1x8x128xf32> to vector<8x128xf32>
    %c0_2 = arith.constant 0 : index
    %c0_3 = arith.constant 0 : index
    %c1 = arith.constant 1 : index
    %2 = vector.load %arg1[%c0_2, %c0_3, %c1] : memref<1x10x130xf32, #tpu.memory_space<vmem>>, vector<1x8x128xf32>
    %3 = vector.shape_cast %2 : vector<1x8x128xf32> to vector<8x128xf32>
    %c0_4 = arith.constant 0 : index
    %c0_5 = arith.constant 0 : index
    %c2 = arith.constant 2 : index
    %4 = vector.load %arg1[%c0_4, %c0_5, %c2] : memref<1x10x130xf32, #tpu.memory_space<vmem>>, vector<1x8x128xf32>
    %5 = vector.shape_cast %4 : vector<1x8x128xf32> to vector<8x128xf32>
    %c0_6 = arith.constant 0 : index
    %c1_7 = arith.constant 1 : index
    %c0_8 = arith.constant 0 : index
    %6 = vector.load %arg1[%c0_6, %c1_7, %c0_8] : memref<1x10x130xf32, #tpu.memory_space<vmem>>, vector<1x8x128xf32>
    %7 = vector.shape_cast %6 : vector<1x8x128xf32> to vector<8x128xf32>
    %c0_9 = arith.constant 0 : index
    %c1_10 = arith.constant 1 : index
    %c1_11 = arith.constant 1 : index
    %8 = vector.load %arg1[%c0_9, %c1_10, %c1_11] : memref<1x10x130xf32, #tpu.memory_space<vmem>>, vector<1x8x128xf32>
    %9 = vector.shape_cast %8 : vector<1x8x128xf32> to vector<8x128xf32>
    %c0_12 = arith.constant 0 : index
    %c1_13 = arith.constant 1 : index
    %c2_14 = arith.constant 2 : index
    %10 = vector.load %arg1[%c0_12, %c1_13, %c2_14] : memref<1x10x130xf32, #tpu.memory_space<vmem>>, vector<1x8x128xf32>
    %11 = vector.shape_cast %10 : vector<1x8x128xf32> to vector<8x128xf32>
    %c0_15 = arith.constant 0 : index
    %c2_16 = arith.constant 2 : index
    %c0_17 = arith.constant 0 : index
    %12 = vector.load %arg1[%c0_15, %c2_16, %c0_17] : memref<1x10x130xf32, #tpu.memory_space<vmem>>, vector<1x8x128xf32>
    %13 = vector.shape_cast %12 : vector<1x8x128xf32> to vector<8x128xf32>
    %c0_18 = arith.constant 0 : index
    %c2_19 = arith.constant 2 : index
    %c1_20 = arith.constant 1 : index
    %14 = vector.load %arg1[%c0_18, %c2_19, %c1_20] : memref<1x10x130xf32, #tpu.memory_space<vmem>>, vector<1x8x128xf32>
    %15 = vector.shape_cast %14 : vector<1x8x128xf32> to vector<8x128xf32>
    %c0_21 = arith.constant 0 : index
    %c2_22 = arith.constant 2 : index
    %c2_23 = arith.constant 2 : index
    %16 = vector.load %arg1[%c0_21, %c2_22, %c2_23] : memref<1x10x130xf32, #tpu.memory_space<vmem>>, vector<1x8x128xf32>
    %17 = vector.shape_cast %16 : vector<1x8x128xf32> to vector<8x128xf32>
    %c0_24 = arith.constant 0 : index
    %18 = memref.load %arg3[%c0_24] : memref<10xf32, #tpu.memory_space<smem>>
    %19 = vector.broadcast %18 : f32 to vector<8x128xf32>
    %c0_25 = arith.constant 0 : index
    %20 = memref.load %arg2[%c0_25] : memref<90xf32, #tpu.memory_space<smem>>
    %21 = vector.broadcast %20 : f32 to vector<8x128xf32>
    %22 = arith.mulf %1, %21 : vector<8x128xf32>
    %23 = arith.addf %19, %22 : vector<8x128xf32>
    %c1_26 = arith.constant 1 : index
    %24 = memref.load %arg2[%c1_26] : memref<90xf32, #tpu.memory_space<smem>>
    %25 = vector.broadcast %24 : f32 to vector<8x128xf32>
    %26 = arith.mulf %3, %25 : vector<8x128xf32>
    %27 = arith.addf %23, %26 : vector<8x128xf32>
    %c2_27 = arith.constant 2 : index
    %28 = memref.load %arg2[%c2_27] : memref<90xf32, #tpu.memory_space<smem>>
    %29 = vector.broadcast %28 : f32 to vector<8x128xf32>
    %30 = arith.mulf %5, %29 : vector<8x128xf32>
    %31 = arith.addf %27, %30 : vector<8x128xf32>
    %c3 = arith.constant 3 : index
    %32 = memref.load %arg2[%c3] : memref<90xf32, #tpu.memory_space<smem>>
    %33 = vector.broadcast %32 : f32 to vector<8x128xf32>
    %34 = arith.mulf %7, %33 : vector<8x128xf32>
    %35 = arith.addf %31, %34 : vector<8x128xf32>
    %c4 = arith.constant 4 : index
    %36 = memref.load %arg2[%c4] : memref<90xf32, #tpu.memory_space<smem>>
    %37 = vector.broadcast %36 : f32 to vector<8x128xf32>
    %38 = arith.mulf %9, %37 : vector<8x128xf32>
    %39 = arith.addf %35, %38 : vector<8x128xf32>
    %c5 = arith.constant 5 : index
    %40 = memref.load %arg2[%c5] : memref<90xf32, #tpu.memory_space<smem>>
    %41 = vector.broadcast %40 : f32 to vector<8x128xf32>
    %42 = arith.mulf %11, %41 : vector<8x128xf32>
    %43 = arith.addf %39, %42 : vector<8x128xf32>
    %c6 = arith.constant 6 : index
    %44 = memref.load %arg2[%c6] : memref<90xf32, #tpu.memory_space<smem>>
    %45 = vector.broadcast %44 : f32 to vector<8x128xf32>
    %46 = arith.mulf %13, %45 : vector<8x128xf32>
    %47 = arith.addf %43, %46 : vector<8x128xf32>
    %c7 = arith.constant 7 : index
    %48 = memref.load %arg2[%c7] : memref<90xf32, #tpu.memory_space<smem>>
    %49 = vector.broadcast %48 : f32 to vector<8x128xf32>
    %50 = arith.mulf %15, %49 : vector<8x128xf32>
    %51 = arith.addf %47, %50 : vector<8x128xf32>
    %c8 = arith.constant 8 : index
    %52 = memref.load %arg2[%c8] : memref<90xf32, #tpu.memory_space<smem>>
    %53 = vector.broadcast %52 : f32 to vector<8x128xf32>
    %54 = arith.mulf %17, %53 : vector<8x128xf32>
    %55 = arith.addf %51, %54 : vector<8x128xf32>
    %cst = arith.constant 0.000000e+00 : f32
    %56 = vector.broadcast %cst : f32 to vector<8x128xf32>
    %57 = arith.maximumf %55, %56 : vector<8x128xf32>
    %58 = arith.truncf %57 : vector<8x128xf32> to vector<8x128xbf16>
    %c0_28 = arith.constant 0 : index
    %c0_29 = arith.constant 0 : index
    %c0_30 = arith.constant 0 : index
    %c0_31 = arith.constant 0 : index
    %59 = vector.load %arg4[%c0_28, %c0_29, %c0_30, %c0_31] : memref<1x10x8x128xbf16, #tpu.memory_space<vmem>>, vector<1x1x8x128xbf16>
    %60 = vector.shape_cast %59 : vector<1x1x8x128xbf16> to vector<8x128xbf16>
    %61 = vector.shape_cast %58 : vector<8x128xbf16> to vector<1x1x8x128xbf16>
    tpu.vector_store %arg4[%c0_28, %c0_29, %c0_30, %c0_31], %61 {strides = array<i32>} : memref<1x10x8x128xbf16, #tpu.memory_space<vmem>>, vector<1x1x8x128xbf16>,
    %c1_32 = arith.constant 1 : index
    %62 = memref.load %arg3[%c1_32] : memref<10xf32, #tpu.memory_space<smem>>
    %63 = vector.broadcast %62 : f32 to vector<8x128xf32>
    %c9 = arith.constant 9 : index
    %64 = memref.load %arg2[%c9] : memref<90xf32, #tpu.memory_space<smem>>
    %65 = vector.broadcast %64 : f32 to vector<8x128xf32>
    %66 = arith.mulf %1, %65 : vector<8x128xf32>
    %67 = arith.addf %63, %66 : vector<8x128xf32>
    %c10 = arith.constant 10 : index
    %68 = memref.load %arg2[%c10] : memref<90xf32, #tpu.memory_space<smem>>
    %69 = vector.broadcast %68 : f32 to vector<8x128xf32>
    %70 = arith.mulf %3, %69 : vector<8x128xf32>
    %71 = arith.addf %67, %70 : vector<8x128xf32>
    %c11 = arith.constant 11 : index
    %72 = memref.load %arg2[%c11] : memref<90xf32, #tpu.memory_space<smem>>
    %73 = vector.broadcast %72 : f32 to vector<8x128xf32>
    %74 = arith.mulf %5, %73 : vector<8x128xf32>
    %75 = arith.addf %71, %74 : vector<8x128xf32>
    %c12 = arith.constant 12 : index
    %76 = memref.load %arg2[%c12] : memref<90xf32, #tpu.memory_space<smem>>
    %77 = vector.broadcast %76 : f32 to vector<8x128xf32>
    %78 = arith.mulf %7, %77 : vector<8x128xf32>
    %79 = arith.addf %75, %78 : vector<8x128xf32>
    %c13 = arith.constant 13 : index
    %80 = memref.load %arg2[%c13] : memref<90xf32, #tpu.memory_space<smem>>
    %81 = vector.broadcast %80 : f32 to vector<8x128xf32>
    %82 = arith.mulf %9, %81 : vector<8x128xf32>
    %83 = arith.addf %79, %82 : vector<8x128xf32>
    %c14 = arith.constant 14 : index
    %84 = memref.load %arg2[%c14] : memref<90xf32, #tpu.memory_space<smem>>
    %85 = vector.broadcast %84 : f32 to vector<8x128xf32>
    %86 = arith.mulf %11, %85 : vector<8x128xf32>
    %87 = arith.addf %83, %86 : vector<8x128xf32>
    %c15 = arith.constant 15 : index
    %88 = memref.load %arg2[%c15] : memref<90xf32, #tpu.memory_space<smem>>
    %89 = vector.broadcast %88 : f32 to vector<8x128xf32>
    %90 = arith.mulf %13, %89 : vector<8x128xf32>
    %91 = arith.addf %87, %90 : vector<8x128xf32>
    %c16 = arith.constant 16 : index
    %92 = memref.load %arg2[%c16] : memref<90xf32, #tpu.memory_space<smem>>
    %93 = vector.broadcast %92 : f32 to vector<8x128xf32>
    %94 = arith.mulf %15, %93 : vector<8x128xf32>
    %95 = arith.addf %91, %94 : vector<8x128xf32>
    %c17 = arith.constant 17 : index
    %96 = memref.load %arg2[%c17] : memref<90xf32, #tpu.memory_space<smem>>
    %97 = vector.broadcast %96 : f32 to vector<8x128xf32>
    %98 = arith.mulf %17, %97 : vector<8x128xf32>
    %99 = arith.addf %95, %98 : vector<8x128xf32>
    %cst_33 = arith.constant 0.000000e+00 : f32
    %100 = vector.broadcast %cst_33 : f32 to vector<8x128xf32>
    %101 = arith.maximumf %99, %100 : vector<8x128xf32>
    %102 = arith.truncf %101 : vector<8x128xf32> to vector<8x128xbf16>
    %c0_34 = arith.constant 0 : index
    %c1_35 = arith.constant 1 : index
    %c0_36 = arith.constant 0 : index
    %c0_37 = arith.constant 0 : index
    %103 = vector.load %arg4[%c0_34, %c1_35, %c0_36, %c0_37] : memref<1x10x8x128xbf16, #tpu.memory_space<vmem>>, vector<1x1x8x128xbf16>
    %104 = vector.shape_cast %103 : vector<1x1x8x128xbf16> to vector<8x128xbf16>
    %105 = vector.shape_cast %102 : vector<8x128xbf16> to vector<1x1x8x128xbf16>
    tpu.vector_store %arg4[%c0_34, %c1_35, %c0_36, %c0_37], %105 {strides = array<i32>} : memref<1x10x8x128xbf16, #tpu.memory_space<vmem>>, vector<1x1x8x128xbf16>,
    %c2_38 = arith.constant 2 : index
    %106 = memref.load %arg3[%c2_38] : memref<10xf32, #tpu.memory_space<smem>>
    %107 = vector.broadcast %106 : f32 to vector<8x128xf32>
    %c18 = arith.constant 18 : index
    %108 = memref.load %arg2[%c18] : memref<90xf32, #tpu.memory_space<smem>>
    %109 = vector.broadcast %108 : f32 to vector<8x128xf32>
    %110 = arith.mulf %1, %109 : vector<8x128xf32>
    %111 = arith.addf %107, %110 : vector<8x128xf32>
    %c19 = arith.constant 19 : index
    %112 = memref.load %arg2[%c19] : memref<90xf32, #tpu.memory_space<smem>>
    %113 = vector.broadcast %112 : f32 to vector<8x128xf32>
    %114 = arith.mulf %3, %113 : vector<8x128xf32>
    %115 = arith.addf %111, %114 : vector<8x128xf32>
    %c20 = arith.constant 20 : index
    %116 = memref.load %arg2[%c20] : memref<90xf32, #tpu.memory_space<smem>>
    %117 = vector.broadcast %116 : f32 to vector<8x128xf32>
    %118 = arith.mulf %5, %117 : vector<8x128xf32>
    %119 = arith.addf %115, %118 : vector<8x128xf32>
    %c21 = arith.constant 21 : index
    %120 = memref.load %arg2[%c21] : memref<90xf32, #tpu.memory_space<smem>>
    %121 = vector.broadcast %120 : f32 to vector<8x128xf32>
    %122 = arith.mulf %7, %121 : vector<8x128xf32>
    %123 = arith.addf %119, %122 : vector<8x128xf32>
    %c22 = arith.constant 22 : index
    %124 = memref.load %arg2[%c22] : memref<90xf32, #tpu.memory_space<smem>>
    %125 = vector.broadcast %124 : f32 to vector<8x128xf32>
    %126 = arith.mulf %9, %125 : vector<8x128xf32>
    %127 = arith.addf %123, %126 : vector<8x128xf32>
    %c23 = arith.constant 23 : index
    %128 = memref.load %arg2[%c23] : memref<90xf32, #tpu.memory_space<smem>>
    %129 = vector.broadcast %128 : f32 to vector<8x128xf32>
    %130 = arith.mulf %11, %129 : vector<8x128xf32>
    %131 = arith.addf %127, %130 : vector<8x128xf32>
    %c24 = arith.constant 24 : index
    %132 = memref.load %arg2[%c24] : memref<90xf32, #tpu.memory_space<smem>>
    %133 = vector.broadcast %132 : f32 to vector<8x128xf32>
    %134 = arith.mulf %13, %133 : vector<8x128xf32>
    %135 = arith.addf %131, %134 : vector<8x128xf32>
    %c25 = arith.constant 25 : index
    %136 = memref.load %arg2[%c25] : memref<90xf32, #tpu.memory_space<smem>>
    %137 = vector.broadcast %136 : f32 to vector<8x128xf32>
    %138 = arith.mulf %15, %137 : vector<8x128xf32>
    %139 = arith.addf %135, %138 : vector<8x128xf32>
    %c26 = arith.constant 26 : index
    %140 = memref.load %arg2[%c26] : memref<90xf32, #tpu.memory_space<smem>>
    %141 = vector.broadcast %140 : f32 to vector<8x128xf32>
    %142 = arith.mulf %17, %141 : vector<8x128xf32>
    %143 = arith.addf %139, %142 : vector<8x128xf32>
    %cst_39 = arith.constant 0.000000e+00 : f32
    %144 = vector.broadcast %cst_39 : f32 to vector<8x128xf32>
    %145 = arith.maximumf %143, %144 : vector<8x128xf32>
    %146 = arith.truncf %145 : vector<8x128xf32> to vector<8x128xbf16>
    %c0_40 = arith.constant 0 : index
    %c2_41 = arith.constant 2 : index
    %c0_42 = arith.constant 0 : index
    %c0_43 = arith.constant 0 : index
    %147 = vector.load %arg4[%c0_40, %c2_41, %c0_42, %c0_43] : memref<1x10x8x128xbf16, #tpu.memory_space<vmem>>, vector<1x1x8x128xbf16>
    %148 = vector.shape_cast %147 : vector<1x1x8x128xbf16> to vector<8x128xbf16>
    %149 = vector.shape_cast %146 : vector<8x128xbf16> to vector<1x1x8x128xbf16>
    tpu.vector_store %arg4[%c0_40, %c2_41, %c0_42, %c0_43], %149 {strides = array<i32>} : memref<1x10x8x128xbf16, #tpu.memory_space<vmem>>, vector<1x1x8x128xbf16>,
    %c3_44 = arith.constant 3 : index
    %150 = memref.load %arg3[%c3_44] : memref<10xf32, #tpu.memory_space<smem>>
    %151 = vector.broadcast %150 : f32 to vector<8x128xf32>
    %c27 = arith.constant 27 : index
    %152 = memref.load %arg2[%c27] : memref<90xf32, #tpu.memory_space<smem>>
    %153 = vector.broadcast %152 : f32 to vector<8x128xf32>
    %154 = arith.mulf %1, %153 : vector<8x128xf32>
    %155 = arith.addf %151, %154 : vector<8x128xf32>
    %c28 = arith.constant 28 : index
    %156 = memref.load %arg2[%c28] : memref<90xf32, #tpu.memory_space<smem>>
    %157 = vector.broadcast %156 : f32 to vector<8x128xf32>
    %158 = arith.mulf %3, %157 : vector<8x128xf32>
    %159 = arith.addf %155, %158 : vector<8x128xf32>
    %c29 = arith.constant 29 : index
    %160 = memref.load %arg2[%c29] : memref<90xf32, #tpu.memory_space<smem>>
    %161 = vector.broadcast %160 : f32 to vector<8x128xf32>
    %162 = arith.mulf %5, %161 : vector<8x128xf32>
    %163 = arith.addf %159, %162 : vector<8x128xf32>
    %c30 = arith.constant 30 : index
    %164 = memref.load %arg2[%c30] : memref<90xf32, #tpu.memory_space<smem>>
    %165 = vector.broadcast %164 : f32 to vector<8x128xf32>
    %166 = arith.mulf %7, %165 : vector<8x128xf32>
    %167 = arith.addf %163, %166 : vector<8x128xf32>
    %c31 = arith.constant 31 : index
    %168 = memref.load %arg2[%c31] : memref<90xf32, #tpu.memory_space<smem>>
    %169 = vector.broadcast %168 : f32 to vector<8x128xf32>
    %170 = arith.mulf %9, %169 : vector<8x128xf32>
    %171 = arith.addf %167, %170 : vector<8x128xf32>
    %c32 = arith.constant 32 : index
    %172 = memref.load %arg2[%c32] : memref<90xf32, #tpu.memory_space<smem>>
    %173 = vector.broadcast %172 : f32 to vector<8x128xf32>
    %174 = arith.mulf %11, %173 : vector<8x128xf32>
    %175 = arith.addf %171, %174 : vector<8x128xf32>
    %c33 = arith.constant 33 : index
    %176 = memref.load %arg2[%c33] : memref<90xf32, #tpu.memory_space<smem>>
    %177 = vector.broadcast %176 : f32 to vector<8x128xf32>
    %178 = arith.mulf %13, %177 : vector<8x128xf32>
    %179 = arith.addf %175, %178 : vector<8x128xf32>
    %c34 = arith.constant 34 : index
    %180 = memref.load %arg2[%c34] : memref<90xf32, #tpu.memory_space<smem>>
    %181 = vector.broadcast %180 : f32 to vector<8x128xf32>
    %182 = arith.mulf %15, %181 : vector<8x128xf32>
    %183 = arith.addf %179, %182 : vector<8x128xf32>
    %c35 = arith.constant 35 : index
    %184 = memref.load %arg2[%c35] : memref<90xf32, #tpu.memory_space<smem>>
    %185 = vector.broadcast %184 : f32 to vector<8x128xf32>
    %186 = arith.mulf %17, %185 : vector<8x128xf32>
    %187 = arith.addf %183, %186 : vector<8x128xf32>
    %cst_45 = arith.constant 0.000000e+00 : f32
    %188 = vector.broadcast %cst_45 : f32 to vector<8x128xf32>
    %189 = arith.maximumf %187, %188 : vector<8x128xf32>
    %190 = arith.truncf %189 : vector<8x128xf32> to vector<8x128xbf16>
    %c0_46 = arith.constant 0 : index
    %c3_47 = arith.constant 3 : index
    %c0_48 = arith.constant 0 : index
    %c0_49 = arith.constant 0 : index
    %191 = vector.load %arg4[%c0_46, %c3_47, %c0_48, %c0_49] : memref<1x10x8x128xbf16, #tpu.memory_space<vmem>>, vector<1x1x8x128xbf16>
    %192 = vector.shape_cast %191 : vector<1x1x8x128xbf16> to vector<8x128xbf16>
    %193 = vector.shape_cast %190 : vector<8x128xbf16> to vector<1x1x8x128xbf16>
    tpu.vector_store %arg4[%c0_46, %c3_47, %c0_48, %c0_49], %193 {strides = array<i32>} : memref<1x10x8x128xbf16, #tpu.memory_space<vmem>>, vector<1x1x8x128xbf16>,
    %c4_50 = arith.constant 4 : index
    %194 = memref.load %arg3[%c4_50] : memref<10xf32, #tpu.memory_space<smem>>
    %195 = vector.broadcast %194 : f32 to vector<8x128xf32>
    %c36 = arith.constant 36 : index
    %196 = memref.load %arg2[%c36] : memref<90xf32, #tpu.memory_space<smem>>
    %197 = vector.broadcast %196 : f32 to vector<8x128xf32>
    %198 = arith.mulf %1, %197 : vector<8x128xf32>
    %199 = arith.addf %195, %198 : vector<8x128xf32>
    %c37 = arith.constant 37 : index
    %200 = memref.load %arg2[%c37] : memref<90xf32, #tpu.memory_space<smem>>
    %201 = vector.broadcast %200 : f32 to vector<8x128xf32>
    %202 = arith.mulf %3, %201 : vector<8x128xf32>
    %203 = arith.addf %199, %202 : vector<8x128xf32>
    %c38 = arith.constant 38 : index
    %204 = memref.load %arg2[%c38] : memref<90xf32, #tpu.memory_space<smem>>
    %205 = vector.broadcast %204 : f32 to vector<8x128xf32>
    %206 = arith.mulf %5, %205 : vector<8x128xf32>
    %207 = arith.addf %203, %206 : vector<8x128xf32>
    %c39 = arith.constant 39 : index
    %208 = memref.load %arg2[%c39] : memref<90xf32, #tpu.memory_space<smem>>
    %209 = vector.broadcast %208 : f32 to vector<8x128xf32>
    %210 = arith.mulf %7, %209 : vector<8x128xf32>
    %211 = arith.addf %207, %210 : vector<8x128xf32>
    %c40 = arith.constant 40 : index
    %212 = memref.load %arg2[%c40] : memref<90xf32, #tpu.memory_space<smem>>
    %213 = vector.broadcast %212 : f32 to vector<8x128xf32>
    %214 = arith.mulf %9, %213 : vector<8x128xf32>
    %215 = arith.addf %211, %214 : vector<8x128xf32>
    %c41 = arith.constant 41 : index
    %216 = memref.load %arg2[%c41] : memref<90xf32, #tpu.memory_space<smem>>
    %217 = vector.broadcast %216 : f32 to vector<8x128xf32>
    %218 = arith.mulf %11, %217 : vector<8x128xf32>
    %219 = arith.addf %215, %218 : vector<8x128xf32>
    %c42 = arith.constant 42 : index
    %220 = memref.load %arg2[%c42] : memref<90xf32, #tpu.memory_space<smem>>
    %221 = vector.broadcast %220 : f32 to vector<8x128xf32>
    %222 = arith.mulf %13, %221 : vector<8x128xf32>
    %223 = arith.addf %219, %222 : vector<8x128xf32>
    %c43 = arith.constant 43 : index
    %224 = memref.load %arg2[%c43] : memref<90xf32, #tpu.memory_space<smem>>
    %225 = vector.broadcast %224 : f32 to vector<8x128xf32>
    %226 = arith.mulf %15, %225 : vector<8x128xf32>
    %227 = arith.addf %223, %226 : vector<8x128xf32>
    %c44 = arith.constant 44 : index
    %228 = memref.load %arg2[%c44] : memref<90xf32, #tpu.memory_space<smem>>
    %229 = vector.broadcast %228 : f32 to vector<8x128xf32>
    %230 = arith.mulf %17, %229 : vector<8x128xf32>
    %231 = arith.addf %227, %230 : vector<8x128xf32>
    %cst_51 = arith.constant 0.000000e+00 : f32
    %232 = vector.broadcast %cst_51 : f32 to vector<8x128xf32>
    %233 = arith.maximumf %231, %232 : vector<8x128xf32>
    %234 = arith.truncf %233 : vector<8x128xf32> to vector<8x128xbf16>
    %c0_52 = arith.constant 0 : index
    %c4_53 = arith.constant 4 : index
    %c0_54 = arith.constant 0 : index
    %c0_55 = arith.constant 0 : index
    %235 = vector.load %arg4[%c0_52, %c4_53, %c0_54, %c0_55] : memref<1x10x8x128xbf16, #tpu.memory_space<vmem>>, vector<1x1x8x128xbf16>
    %236 = vector.shape_cast %235 : vector<1x1x8x128xbf16> to vector<8x128xbf16>
    %237 = vector.shape_cast %234 : vector<8x128xbf16> to vector<1x1x8x128xbf16>
    tpu.vector_store %arg4[%c0_52, %c4_53, %c0_54, %c0_55], %237 {strides = array<i32>} : memref<1x10x8x128xbf16, #tpu.memory_space<vmem>>, vector<1x1x8x128xbf16>,
    %c5_56 = arith.constant 5 : index
    %238 = memref.load %arg3[%c5_56] : memref<10xf32, #tpu.memory_space<smem>>
    %239 = vector.broadcast %238 : f32 to vector<8x128xf32>
    %c45 = arith.constant 45 : index
    %240 = memref.load %arg2[%c45] : memref<90xf32, #tpu.memory_space<smem>>
    %241 = vector.broadcast %240 : f32 to vector<8x128xf32>
    %242 = arith.mulf %1, %241 : vector<8x128xf32>
    %243 = arith.addf %239, %242 : vector<8x128xf32>
    %c46 = arith.constant 46 : index
    %244 = memref.load %arg2[%c46] : memref<90xf32, #tpu.memory_space<smem>>
    %245 = vector.broadcast %244 : f32 to vector<8x128xf32>
    %246 = arith.mulf %3, %245 : vector<8x128xf32>
    %247 = arith.addf %243, %246 : vector<8x128xf32>
    %c47 = arith.constant 47 : index
    %248 = memref.load %arg2[%c47] : memref<90xf32, #tpu.memory_space<smem>>
    %249 = vector.broadcast %248 : f32 to vector<8x128xf32>
    %250 = arith.mulf %5, %249 : vector<8x128xf32>
    %251 = arith.addf %247, %250 : vector<8x128xf32>
    %c48 = arith.constant 48 : index
    %252 = memref.load %arg2[%c48] : memref<90xf32, #tpu.memory_space<smem>>
    %253 = vector.broadcast %252 : f32 to vector<8x128xf32>
    %254 = arith.mulf %7, %253 : vector<8x128xf32>
    %255 = arith.addf %251, %254 : vector<8x128xf32>
    %c49 = arith.constant 49 : index
    %256 = memref.load %arg2[%c49] : memref<90xf32, #tpu.memory_space<smem>>
    %257 = vector.broadcast %256 : f32 to vector<8x128xf32>
    %258 = arith.mulf %9, %257 : vector<8x128xf32>
    %259 = arith.addf %255, %258 : vector<8x128xf32>
    %c50 = arith.constant 50 : index
    %260 = memref.load %arg2[%c50] : memref<90xf32, #tpu.memory_space<smem>>
    %261 = vector.broadcast %260 : f32 to vector<8x128xf32>
    %262 = arith.mulf %11, %261 : vector<8x128xf32>
    %263 = arith.addf %259, %262 : vector<8x128xf32>
    %c51 = arith.constant 51 : index
    %264 = memref.load %arg2[%c51] : memref<90xf32, #tpu.memory_space<smem>>
    %265 = vector.broadcast %264 : f32 to vector<8x128xf32>
    %266 = arith.mulf %13, %265 : vector<8x128xf32>
    %267 = arith.addf %263, %266 : vector<8x128xf32>
    %c52 = arith.constant 52 : index
    %268 = memref.load %arg2[%c52] : memref<90xf32, #tpu.memory_space<smem>>
    %269 = vector.broadcast %268 : f32 to vector<8x128xf32>
    %270 = arith.mulf %15, %269 : vector<8x128xf32>
    %271 = arith.addf %267, %270 : vector<8x128xf32>
    %c53 = arith.constant 53 : index
    %272 = memref.load %arg2[%c53] : memref<90xf32, #tpu.memory_space<smem>>
    %273 = vector.broadcast %272 : f32 to vector<8x128xf32>
    %274 = arith.mulf %17, %273 : vector<8x128xf32>
    %275 = arith.addf %271, %274 : vector<8x128xf32>
    %cst_57 = arith.constant 0.000000e+00 : f32
    %276 = vector.broadcast %cst_57 : f32 to vector<8x128xf32>
    %277 = arith.maximumf %275, %276 : vector<8x128xf32>
    %278 = arith.truncf %277 : vector<8x128xf32> to vector<8x128xbf16>
    %c0_58 = arith.constant 0 : index
    %c5_59 = arith.constant 5 : index
    %c0_60 = arith.constant 0 : index
    %c0_61 = arith.constant 0 : index
    %279 = vector.load %arg4[%c0_58, %c5_59, %c0_60, %c0_61] : memref<1x10x8x128xbf16, #tpu.memory_space<vmem>>, vector<1x1x8x128xbf16>
    %280 = vector.shape_cast %279 : vector<1x1x8x128xbf16> to vector<8x128xbf16>
    %281 = vector.shape_cast %278 : vector<8x128xbf16> to vector<1x1x8x128xbf16>
    tpu.vector_store %arg4[%c0_58, %c5_59, %c0_60, %c0_61], %281 {strides = array<i32>} : memref<1x10x8x128xbf16, #tpu.memory_space<vmem>>, vector<1x1x8x128xbf16>,
    %c6_62 = arith.constant 6 : index
    %282 = memref.load %arg3[%c6_62] : memref<10xf32, #tpu.memory_space<smem>>
    %283 = vector.broadcast %282 : f32 to vector<8x128xf32>
    %c54 = arith.constant 54 : index
    %284 = memref.load %arg2[%c54] : memref<90xf32, #tpu.memory_space<smem>>
    %285 = vector.broadcast %284 : f32 to vector<8x128xf32>
    %286 = arith.mulf %1, %285 : vector<8x128xf32>
    %287 = arith.addf %283, %286 : vector<8x128xf32>
    %c55 = arith.constant 55 : index
    %288 = memref.load %arg2[%c55] : memref<90xf32, #tpu.memory_space<smem>>
    %289 = vector.broadcast %288 : f32 to vector<8x128xf32>
    %290 = arith.mulf %3, %289 : vector<8x128xf32>
    %291 = arith.addf %287, %290 : vector<8x128xf32>
    %c56 = arith.constant 56 : index
    %292 = memref.load %arg2[%c56] : memref<90xf32, #tpu.memory_space<smem>>
    %293 = vector.broadcast %292 : f32 to vector<8x128xf32>
    %294 = arith.mulf %5, %293 : vector<8x128xf32>
    %295 = arith.addf %291, %294 : vector<8x128xf32>
    %c57 = arith.constant 57 : index
    %296 = memref.load %arg2[%c57] : memref<90xf32, #tpu.memory_space<smem>>
    %297 = vector.broadcast %296 : f32 to vector<8x128xf32>
    %298 = arith.mulf %7, %297 : vector<8x128xf32>
    %299 = arith.addf %295, %298 : vector<8x128xf32>
    %c58 = arith.constant 58 : index
    %300 = memref.load %arg2[%c58] : memref<90xf32, #tpu.memory_space<smem>>
    %301 = vector.broadcast %300 : f32 to vector<8x128xf32>
    %302 = arith.mulf %9, %301 : vector<8x128xf32>
    %303 = arith.addf %299, %302 : vector<8x128xf32>
    %c59 = arith.constant 59 : index
    %304 = memref.load %arg2[%c59] : memref<90xf32, #tpu.memory_space<smem>>
    %305 = vector.broadcast %304 : f32 to vector<8x128xf32>
    %306 = arith.mulf %11, %305 : vector<8x128xf32>
    %307 = arith.addf %303, %306 : vector<8x128xf32>
    %c60 = arith.constant 60 : index
    %308 = memref.load %arg2[%c60] : memref<90xf32, #tpu.memory_space<smem>>
    %309 = vector.broadcast %308 : f32 to vector<8x128xf32>
    %310 = arith.mulf %13, %309 : vector<8x128xf32>
    %311 = arith.addf %307, %310 : vector<8x128xf32>
    %c61 = arith.constant 61 : index
    %312 = memref.load %arg2[%c61] : memref<90xf32, #tpu.memory_space<smem>>
    %313 = vector.broadcast %312 : f32 to vector<8x128xf32>
    %314 = arith.mulf %15, %313 : vector<8x128xf32>
    %315 = arith.addf %311, %314 : vector<8x128xf32>
    %c62 = arith.constant 62 : index
    %316 = memref.load %arg2[%c62] : memref<90xf32, #tpu.memory_space<smem>>
    %317 = vector.broadcast %316 : f32 to vector<8x128xf32>
    %318 = arith.mulf %17, %317 : vector<8x128xf32>
    %319 = arith.addf %315, %318 : vector<8x128xf32>
    %cst_63 = arith.constant 0.000000e+00 : f32
    %320 = vector.broadcast %cst_63 : f32 to vector<8x128xf32>
    %321 = arith.maximumf %319, %320 : vector<8x128xf32>
    %322 = arith.truncf %321 : vector<8x128xf32> to vector<8x128xbf16>
    %c0_64 = arith.constant 0 : index
    %c6_65 = arith.constant 6 : index
    %c0_66 = arith.constant 0 : index
    %c0_67 = arith.constant 0 : index
    %323 = vector.load %arg4[%c0_64, %c6_65, %c0_66, %c0_67] : memref<1x10x8x128xbf16, #tpu.memory_space<vmem>>, vector<1x1x8x128xbf16>
    %324 = vector.shape_cast %323 : vector<1x1x8x128xbf16> to vector<8x128xbf16>
    %325 = vector.shape_cast %322 : vector<8x128xbf16> to vector<1x1x8x128xbf16>
    tpu.vector_store %arg4[%c0_64, %c6_65, %c0_66, %c0_67], %325 {strides = array<i32>} : memref<1x10x8x128xbf16, #tpu.memory_space<vmem>>, vector<1x1x8x128xbf16>,
    %c7_68 = arith.constant 7 : index
    %326 = memref.load %arg3[%c7_68] : memref<10xf32, #tpu.memory_space<smem>>
    %327 = vector.broadcast %326 : f32 to vector<8x128xf32>
    %c63 = arith.constant 63 : index
    %328 = memref.load %arg2[%c63] : memref<90xf32, #tpu.memory_space<smem>>
    %329 = vector.broadcast %328 : f32 to vector<8x128xf32>
    %330 = arith.mulf %1, %329 : vector<8x128xf32>
    %331 = arith.addf %327, %330 : vector<8x128xf32>
    %c64 = arith.constant 64 : index
    %332 = memref.load %arg2[%c64] : memref<90xf32, #tpu.memory_space<smem>>
    %333 = vector.broadcast %332 : f32 to vector<8x128xf32>
    %334 = arith.mulf %3, %333 : vector<8x128xf32>
    %335 = arith.addf %331, %334 : vector<8x128xf32>
    %c65 = arith.constant 65 : index
    %336 = memref.load %arg2[%c65] : memref<90xf32, #tpu.memory_space<smem>>
    %337 = vector.broadcast %336 : f32 to vector<8x128xf32>
    %338 = arith.mulf %5, %337 : vector<8x128xf32>
    %339 = arith.addf %335, %338 : vector<8x128xf32>
    %c66 = arith.constant 66 : index
    %340 = memref.load %arg2[%c66] : memref<90xf32, #tpu.memory_space<smem>>
    %341 = vector.broadcast %340 : f32 to vector<8x128xf32>
    %342 = arith.mulf %7, %341 : vector<8x128xf32>
    %343 = arith.addf %339, %342 : vector<8x128xf32>
    %c67 = arith.constant 67 : index
    %344 = memref.load %arg2[%c67] : memref<90xf32, #tpu.memory_space<smem>>
    %345 = vector.broadcast %344 : f32 to vector<8x128xf32>
    %346 = arith.mulf %9, %345 : vector<8x128xf32>
    %347 = arith.addf %343, %346 : vector<8x128xf32>
    %c68 = arith.constant 68 : index
    %348 = memref.load %arg2[%c68] : memref<90xf32, #tpu.memory_space<smem>>
    %349 = vector.broadcast %348 : f32 to vector<8x128xf32>
    %350 = arith.mulf %11, %349 : vector<8x128xf32>
    %351 = arith.addf %347, %350 : vector<8x128xf32>
    %c69 = arith.constant 69 : index
    %352 = memref.load %arg2[%c69] : memref<90xf32, #tpu.memory_space<smem>>
    %353 = vector.broadcast %352 : f32 to vector<8x128xf32>
    %354 = arith.mulf %13, %353 : vector<8x128xf32>
    %355 = arith.addf %351, %354 : vector<8x128xf32>
    %c70 = arith.constant 70 : index
    %356 = memref.load %arg2[%c70] : memref<90xf32, #tpu.memory_space<smem>>
    %357 = vector.broadcast %356 : f32 to vector<8x128xf32>
    %358 = arith.mulf %15, %357 : vector<8x128xf32>
    %359 = arith.addf %355, %358 : vector<8x128xf32>
    %c71 = arith.constant 71 : index
    %360 = memref.load %arg2[%c71] : memref<90xf32, #tpu.memory_space<smem>>
    %361 = vector.broadcast %360 : f32 to vector<8x128xf32>
    %362 = arith.mulf %17, %361 : vector<8x128xf32>
    %363 = arith.addf %359, %362 : vector<8x128xf32>
    %cst_69 = arith.constant 0.000000e+00 : f32
    %364 = vector.broadcast %cst_69 : f32 to vector<8x128xf32>
    %365 = arith.maximumf %363, %364 : vector<8x128xf32>
    %366 = arith.truncf %365 : vector<8x128xf32> to vector<8x128xbf16>
    %c0_70 = arith.constant 0 : index
    %c7_71 = arith.constant 7 : index
    %c0_72 = arith.constant 0 : index
    %c0_73 = arith.constant 0 : index
    %367 = vector.load %arg4[%c0_70, %c7_71, %c0_72, %c0_73] : memref<1x10x8x128xbf16, #tpu.memory_space<vmem>>, vector<1x1x8x128xbf16>
    %368 = vector.shape_cast %367 : vector<1x1x8x128xbf16> to vector<8x128xbf16>
    %369 = vector.shape_cast %366 : vector<8x128xbf16> to vector<1x1x8x128xbf16>
    tpu.vector_store %arg4[%c0_70, %c7_71, %c0_72, %c0_73], %369 {strides = array<i32>} : memref<1x10x8x128xbf16, #tpu.memory_space<vmem>>, vector<1x1x8x128xbf16>,
    %c8_74 = arith.constant 8 : index
    %370 = memref.load %arg3[%c8_74] : memref<10xf32, #tpu.memory_space<smem>>
    %371 = vector.broadcast %370 : f32 to vector<8x128xf32>
    %c72 = arith.constant 72 : index
    %372 = memref.load %arg2[%c72] : memref<90xf32, #tpu.memory_space<smem>>
    %373 = vector.broadcast %372 : f32 to vector<8x128xf32>
    %374 = arith.mulf %1, %373 : vector<8x128xf32>
    %375 = arith.addf %371, %374 : vector<8x128xf32>
    %c73 = arith.constant 73 : index
    %376 = memref.load %arg2[%c73] : memref<90xf32, #tpu.memory_space<smem>>
    %377 = vector.broadcast %376 : f32 to vector<8x128xf32>
    %378 = arith.mulf %3, %377 : vector<8x128xf32>
    %379 = arith.addf %375, %378 : vector<8x128xf32>
    %c74 = arith.constant 74 : index
    %380 = memref.load %arg2[%c74] : memref<90xf32, #tpu.memory_space<smem>>
    %381 = vector.broadcast %380 : f32 to vector<8x128xf32>
    %382 = arith.mulf %5, %381 : vector<8x128xf32>
    %383 = arith.addf %379, %382 : vector<8x128xf32>
    %c75 = arith.constant 75 : index
    %384 = memref.load %arg2[%c75] : memref<90xf32, #tpu.memory_space<smem>>
    %385 = vector.broadcast %384 : f32 to vector<8x128xf32>
    %386 = arith.mulf %7, %385 : vector<8x128xf32>
    %387 = arith.addf %383, %386 : vector<8x128xf32>
    %c76 = arith.constant 76 : index
    %388 = memref.load %arg2[%c76] : memref<90xf32, #tpu.memory_space<smem>>
    %389 = vector.broadcast %388 : f32 to vector<8x128xf32>
    %390 = arith.mulf %9, %389 : vector<8x128xf32>
    %391 = arith.addf %387, %390 : vector<8x128xf32>
    %c77 = arith.constant 77 : index
    %392 = memref.load %arg2[%c77] : memref<90xf32, #tpu.memory_space<smem>>
    %393 = vector.broadcast %392 : f32 to vector<8x128xf32>
    %394 = arith.mulf %11, %393 : vector<8x128xf32>
    %395 = arith.addf %391, %394 : vector<8x128xf32>
    %c78 = arith.constant 78 : index
    %396 = memref.load %arg2[%c78] : memref<90xf32, #tpu.memory_space<smem>>
    %397 = vector.broadcast %396 : f32 to vector<8x128xf32>
    %398 = arith.mulf %13, %397 : vector<8x128xf32>
    %399 = arith.addf %395, %398 : vector<8x128xf32>
    %c79 = arith.constant 79 : index
    %400 = memref.load %arg2[%c79] : memref<90xf32, #tpu.memory_space<smem>>
    %401 = vector.broadcast %400 : f32 to vector<8x128xf32>
    %402 = arith.mulf %15, %401 : vector<8x128xf32>
    %403 = arith.addf %399, %402 : vector<8x128xf32>
    %c80 = arith.constant 80 : index
    %404 = memref.load %arg2[%c80] : memref<90xf32, #tpu.memory_space<smem>>
    %405 = vector.broadcast %404 : f32 to vector<8x128xf32>
    %406 = arith.mulf %17, %405 : vector<8x128xf32>
    %407 = arith.addf %403, %406 : vector<8x128xf32>
    %cst_75 = arith.constant 0.000000e+00 : f32
    %408 = vector.broadcast %cst_75 : f32 to vector<8x128xf32>
    %409 = arith.maximumf %407, %408 : vector<8x128xf32>
    %410 = arith.truncf %409 : vector<8x128xf32> to vector<8x128xbf16>
    %c0_76 = arith.constant 0 : index
    %c8_77 = arith.constant 8 : index
    %c0_78 = arith.constant 0 : index
    %c0_79 = arith.constant 0 : index
    %411 = vector.load %arg4[%c0_76, %c8_77, %c0_78, %c0_79] : memref<1x10x8x128xbf16, #tpu.memory_space<vmem>>, vector<1x1x8x128xbf16>
    %412 = vector.shape_cast %411 : vector<1x1x8x128xbf16> to vector<8x128xbf16>
    %413 = vector.shape_cast %410 : vector<8x128xbf16> to vector<1x1x8x128xbf16>
    tpu.vector_store %arg4[%c0_76, %c8_77, %c0_78, %c0_79], %413 {strides = array<i32>} : memref<1x10x8x128xbf16, #tpu.memory_space<vmem>>, vector<1x1x8x128xbf16>,
    %c9_80 = arith.constant 9 : index
    %414 = memref.load %arg3[%c9_80] : memref<10xf32, #tpu.memory_space<smem>>
    %415 = vector.broadcast %414 : f32 to vector<8x128xf32>
    %c81 = arith.constant 81 : index
    %416 = memref.load %arg2[%c81] : memref<90xf32, #tpu.memory_space<smem>>
    %417 = vector.broadcast %416 : f32 to vector<8x128xf32>
    %418 = arith.mulf %1, %417 : vector<8x128xf32>
    %419 = arith.addf %415, %418 : vector<8x128xf32>
    %c82 = arith.constant 82 : index
    %420 = memref.load %arg2[%c82] : memref<90xf32, #tpu.memory_space<smem>>
    %421 = vector.broadcast %420 : f32 to vector<8x128xf32>
    %422 = arith.mulf %3, %421 : vector<8x128xf32>
    %423 = arith.addf %419, %422 : vector<8x128xf32>
    %c83 = arith.constant 83 : index
    %424 = memref.load %arg2[%c83] : memref<90xf32, #tpu.memory_space<smem>>
    %425 = vector.broadcast %424 : f32 to vector<8x128xf32>
    %426 = arith.mulf %5, %425 : vector<8x128xf32>
    %427 = arith.addf %423, %426 : vector<8x128xf32>
    %c84 = arith.constant 84 : index
    %428 = memref.load %arg2[%c84] : memref<90xf32, #tpu.memory_space<smem>>
    %429 = vector.broadcast %428 : f32 to vector<8x128xf32>
    %430 = arith.mulf %7, %429 : vector<8x128xf32>
    %431 = arith.addf %427, %430 : vector<8x128xf32>
    %c85 = arith.constant 85 : index
    %432 = memref.load %arg2[%c85] : memref<90xf32, #tpu.memory_space<smem>>
    %433 = vector.broadcast %432 : f32 to vector<8x128xf32>
    %434 = arith.mulf %9, %433 : vector<8x128xf32>
    %435 = arith.addf %431, %434 : vector<8x128xf32>
    %c86 = arith.constant 86 : index
    %436 = memref.load %arg2[%c86] : memref<90xf32, #tpu.memory_space<smem>>
    %437 = vector.broadcast %436 : f32 to vector<8x128xf32>
    %438 = arith.mulf %11, %437 : vector<8x128xf32>
    %439 = arith.addf %435, %438 : vector<8x128xf32>
    %c87 = arith.constant 87 : index
    %440 = memref.load %arg2[%c87] : memref<90xf32, #tpu.memory_space<smem>>
    %441 = vector.broadcast %440 : f32 to vector<8x128xf32>
    %442 = arith.mulf %13, %441 : vector<8x128xf32>
    %443 = arith.addf %439, %442 : vector<8x128xf32>
    %c88 = arith.constant 88 : index
    %444 = memref.load %arg2[%c88] : memref<90xf32, #tpu.memory_space<smem>>
    %445 = vector.broadcast %444 : f32 to vector<8x128xf32>
    %446 = arith.mulf %15, %445 : vector<8x128xf32>
    %447 = arith.addf %443, %446 : vector<8x128xf32>
    %c89 = arith.constant 89 : index
    %448 = memref.load %arg2[%c89] : memref<90xf32, #tpu.memory_space<smem>>
    %449 = vector.broadcast %448 : f32 to vector<8x128xf32>
    %450 = arith.mulf %17, %449 : vector<8x128xf32>
    %451 = arith.addf %447, %450 : vector<8x128xf32>
    %cst_81 = arith.constant 0.000000e+00 : f32
    %452 = vector.broadcast %cst_81 : f32 to vector<8x128xf32>
    %453 = arith.maximumf %451, %452 : vector<8x128xf32>
    %454 = arith.truncf %453 : vector<8x128xf32> to vector<8x128xbf16>
    %c0_82 = arith.constant 0 : index
    %c9_83 = arith.constant 9 : index
    %c0_84 = arith.constant 0 : index
    %c0_85 = arith.constant 0 : index
    %455 = vector.load %arg4[%c0_82, %c9_83, %c0_84, %c0_85] : memref<1x10x8x128xbf16, #tpu.memory_space<vmem>>, vector<1x1x8x128xbf16>
    %456 = vector.shape_cast %455 : vector<1x1x8x128xbf16> to vector<8x128xbf16>
    %457 = vector.shape_cast %454 : vector<8x128xbf16> to vector<1x1x8x128xbf16>
    tpu.vector_store %arg4[%c0_82, %c9_83, %c0_84, %c0_85], %457 {strides = array<i32>} : memref<1x10x8x128xbf16, #tpu.memory_space<vmem>>, vector<1x1x8x128xbf16>,
    return
  }
  func.func @transform_0(%arg0: i32) -> (i32, i32, i32) {
    %c0_i32 = arith.constant 0 : i32
    %c0_i32_0 = arith.constant 0 : i32
    %c0_i32_1 = arith.constant 0 : i32
    return %arg0, %c0_i32, %c0_i32_0 : i32, i32, i32
  }
  func.func @transform_1(%arg0: i32) -> i32 {
    %c0_i32 = arith.constant 0 : i32
    %c0_i32_0 = arith.constant 0 : i32
    return %c0_i32 : i32
  }
  func.func @transform_2(%arg0: i32) -> i32 {
    %c0_i32 = arith.constant 0 : i32
    %c0_i32_0 = arith.constant 0 : i32
    return %c0_i32 : i32
  }
  func.func @transform_3(%arg0: i32) -> (i32, i32, i32, i32) {
    %c0_i32 = arith.constant 0 : i32
    %c0_i32_0 = arith.constant 0 : i32
    %c0_i32_1 = arith.constant 0 : i32
    %c0_i32_2 = arith.constant 0 : i32
    return %arg0, %c0_i32, %c0_i32_0, %c0_i32_1 : i32, i32, i32, i32
  }
}

</mosaic_0001>

<bundles_post_ra>
// kernel: tpu_custom_call.1
= control target key start
LH: loop header
LB: loop body
LE: loop exit
PB: predicated region body
PF: predicated region fallthrough
CT: control target
= control target key end

     0   :  { %8 = vsyncpa [#allocation4], 0  ;;  %s3106_s0 = inlined_call_operand.vmem [shape: f32[2,10,130], index: 0, kind: input, shape index: {}]   ;;  %s3107_s1 = inlined_call_operand.vmem [shape: f32[90], index: 1, kind: input, shape index: {}]   ;;  %s3108_s2 = inlined_call_operand.vmem [shape: f32[10], index: 2, kind: input, shape index: {}]   ;;  %s3109_s3 = inlined_call_operand.hbm [shape: bf16[2,10,8,128], index: 3, kind: output, shape index: {}]  }
   0x1   :  { %9 = vsyncpa [#allocation6], 0 }
   0x2   :  { %10 = vsyncpa [#allocation3], 0 }
   0x3   :  { %12 = vsyncpa [#allocation3 + $0x1], 0  ;;  %s2139_s12 = smov 0   ;;  %s2141_s13 = smov 0  }
   0x4   :  { %s2143_s14 = smov 0   ;;  %s2145_s15 = smov 0  }
   0x5 LB: > { %s2160_s16 = sadd.s32 4294967295, %s2111_s15   ;;  %s1809_s17 = sadd.s32 4294967294, %s2111_s15   ;;  %s2111_s15 = sphi %s2145_s15, %s3115_s15   ;;  %s2107_s14 = sphi %s2143_s14, %s3114_s14   ;;  %s2103_s13 = sphi %s2141_s13, %s3113_s13   ;;  %s2099_s12 = sphi %s2139_s12, %s3112_s12  }
   0x6   : > { %s2164_s18 = sadd.s32 1, %s2111_s15   ;;  %s93_s19 = sadd.s32 1, %s2107_s14 }
   0x7   : > { %s90_s20 = ssub.s32 %s2111_s15, %s2164_s18  ;;  %p103_p0 = scmp.ne.s32.totalorder %s2107_s14, %s2103_s13 }
   0x8   : > { %p91_p1 = scmp.eq.s32.totalorder %s90_s20, 0  ;;  %p104_p2 = scmp.eq.s32.totalorder %s2160_s16, 1 }
   0x9   : > { %p109_p3 = scmp.ne.s32.totalorder %s2103_s13, %s2099_s12  ;;  %p110_p4 = scmp.eq.s32.totalorder %s1809_s17, 1 }
   0xa   : > { %s2175_s21 = scalar_select %p91_p1, %s2107_s14, %s93_s19  }
   0xb   : > { %p2177_p5 = por %p104_p2, %p103_p0  ;;  %p2181_p6 = por %p110_p4, %p109_p3 }
   0xc   : > { %p1810_p7 = scmp.ge.s32.totalorder %s2111_s15, 1  ;;  %p117_p8 = scmp.lt.s32.totalorder %s2111_s15, 3 }
   0xd   : > { %p1953_p9 = scmp.eq.s32.totalorder %s2160_s16, 0  ;;  %s129_s26 = sshll.u32 %s3107_s1, 4  ;;  %s130_s26 = int_to_ptr.vmem [resolvable:$true] %s129_s26 }
   0xe   : > { %p118_p10 = pnand %p1810_p7, %p117_p8  ;;  %s139_s29 = sshll.u32 %s3108_s2, 4  ;;  %s140_s29 = int_to_ptr.vmem [resolvable:$true] %s139_s29 }
   0xf   : > { %s2113_s30 = smov [#allocation2]   ;;  %s2114_s4 = smov [#allocation5]  }
  0x10   : > { %p1942_p11 = pneg %p118_p10 }
  0x11   : > { %160 = sbr.rel (%p118_p10) target bundleno = 475 (0x1db), region = 32 }
  0x12   : > { %p1943_p12 = pnand %p1953_p9, %p1942_p11 }
  0x14   : > { %1945 = dma.vmem_to_smem (!%p1943_p12), %s130_s26, 16, %s2113_s30, [#allocation4]  }
  0x15   : > { %1948 = dma.vmem_to_smem (!%p1943_p12), %s140_s29, 16, %s2114_s4, [#allocation6]  }
  0x16   : > { %2086 = dma.done.wait (%p1953_p9), [#allocation4], 16  }
  0x17   : > { %2088 = vsyncadd (%p1953_p9), [#allocation4], 4294967280 }
  0x18   : > { %2090 = dma.done.wait (%p1953_p9), [#allocation6], 16  }
  0x19   : > { %2092 = vsyncadd (%p1953_p9), [#allocation6], 4294967280 }
  0x1a   : > { %172 = sfence }
  0x1b   : > { %p191_p13 = scmp.lt.s32.totalorder %s2160_s16, 1  ;;  %s2205_s5 = sld [smem:[#allocation2 + $0x2]]  ;;  %vm246_vm0 = vcmask 1046528   ;;  %vm304_vm1 = vcmask 1045504   ;;  %vm222_vm2 = vcmask 1039360   ;;  %vm236_vm3 = vcmask 1031168  }
  0x1c   : > { %s2207_s6 = sld [smem:[#allocation2 + $0x1]]  ;;  %s2115_s20 = smov 126  }
  0x1d   : > { %s192_s7 = scalar_select %p191_p13, %s2160_s16, 1 }
  0x1e   : > { %s1822_s8 = sld [smem:[#allocation2 + $0x4]]  ;;  %s2116_s24 = smov 127  }
  0x1f   : > { %s1929_s9 = sshll.u32 %s192_s7, 5  ;;  %s1823_s10 = sld [smem:[#allocation2 + $0x5]] }
  0x20   : > { %s2213_s19 = scalar_lea.vmem %s3106_s0, %s1929_s9  ;;  %s1826_s25 = sld [smem:[#allocation2 + $0x8]] }
  0x21   : > { %v2216_v0 = vld [vmem:[%s2213_s19] sm:$0xff]  ;;  %v227_v1 = vstv %s2205_s5  ;;  %v2223_v3 = vld [vmem:[%s2213_s19 + $0x10] sm:$0x1]  ;;  %v2230_v8 = vld [vmem:[%s2213_s19 + $0x8] sm:$0xff]  ;;  %s1825_s26 = sld [smem:[#allocation2 + $0x7]] }
  0x22   : > { %v2220_v2 = vld [vmem:[%s2213_s19] sm:$0xfe]  ;;  %v228_v4 = vmul.f32 %v227_v1, %v2216_v0  ;;  %v213_v5 = vstv %s2207_s6  ;;  %v2236_v11 = vld [vmem:[%s2213_s19 + $0x8] sm:$0xfe]  ;;  %v2239_v12 = vld [vmem:[%s2213_s19 + $0x18] sm:$0x1]  ;;  %v229_v18 = vmul.f32 %v227_v1, %v2230_v8 }
  0x23   : > { %v214_v6 = vmul.f32 %v213_v5, %v2216_v0  ;;  %v215_v19 = vmul.f32 %v213_v5, %v2230_v8  ;;  %v2254_v29 = vld [vmem:[%s2213_s19] sm:$0xfc]  ;;  %v2257_v30 = vld [vmem:[%s2213_s19 + $0x10] sm:$0x3]  ;;  %v2261_v36 = vld [vmem:[%s2213_s19 + $0x8] sm:$0xfc] }
  0x24   : > { %232 = vrot.lane.b32.xlu1 %v228_v4, %s2115_s20  ;;  %v253_v7 = vstv %s1822_s8  ;;  %v2264_v37 = vld [vmem:[%s2213_s19 + $0x18] sm:$0x3]  ;;  %s1829_s27 = sld [smem:[#allocation2 + $0xa]] }
  0x25   : > { %218 = vrot.lane.b32.xlu0 %v214_v6, %s2116_s24  ;;  %v254_v9 = vmul.f32 %v253_v7, %v2220_v2  ;;  %v256_v10 = vmul.f32 %v253_v7, %v2223_v3  ;;  %v276_v13 = vstv %s1823_s10  ;;  %v255_v16 = vmul.f32 %v253_v7, %v2236_v11  ;;  %s1832_s28 = sld [smem:[#allocation2 + $0xd]] }
  0x26   : > { %v257_v17 = vmul.f32 %v253_v7, %v2239_v12  ;;  %v278_v21 = vmul.f32 %v276_v13, %v2236_v11  ;;  %v280_v22 = vmul.f32 %v276_v13, %v2239_v12  ;;  %v277_v23 = vmul.f32 %v276_v13, %v2220_v2  ;;  %s1830_s29 = sld [smem:[#allocation2 + $0xb]] }
  0x27   : > { %v262_v14 = vrot.slane %v254_v9, 1  ;;  %v263_v15 = vrot.slane %v256_v10, 1  ;;  %v279_v24 = vmul.f32 %v276_v13, %v2223_v3  ;;  %v265_v25 = vrot.slane %v255_v16, 1  ;;  %s1833_s30 = sld [smem:[#allocation2 + $0xe]] }
  0x28   : > { %v266_v26 = vrot.slane %v257_v17, 1  ;;  %v288_v27 = vrot.slane %v278_v21, 1  ;;  %v289_v28 = vrot.slane %v280_v22, 1  ;;  %v285_v31 = vrot.slane %v277_v23, 1  ;;  %s1836_s4 = sld [smem:[#allocation2 + $0x11]] }
  0x29   : > { %v264_v20 = vsel %vm246_vm0, %v262_v14, %v263_v15  ;;  %v286_v32 = vrot.slane %v279_v24, 1  ;;  %v334_v33 = vstv %s1826_s25  ;;  %v311_v34 = vstv %s1825_s26  ;;  %s1835_s5 = sld [smem:[#allocation2 + $0x10]] }
  0x2a   : > { %268 = vrot.lane.b32.xlu2 %v264_v20, %s2116_s24  ;;  %v267_v35 = vsel %vm246_vm0, %v265_v25, %v266_v26  ;;  %v312_v38 = vmul.f32 %v311_v34, %v2254_v29  ;;  %v314_v39 = vmul.f32 %v311_v34, %v2257_v30  ;;  %v290_v40 = vsel %vm246_vm0, %v288_v27, %v289_v28  ;;  %s1840_s6 = sld [smem:[#allocation2 + $0x13]] }
  0x2b   : > { %v335_v41 = vmul.f32 %v334_v33, %v2254_v29  ;;  %v337_v42 = vmul.f32 %v334_v33, %v2257_v30  ;;  %v287_v43 = vsel %vm246_vm0, %v285_v31, %v286_v32  ;;  %v313_v44 = vmul.f32 %v311_v34, %v2261_v36  ;;  %s1843_s7 = sld [smem:[#allocation2 + $0x16]] }
  0x2c   : > { %234 = vrot.lane.b32.xlu1 %v229_v18, %s2115_s20  ;;  %v315_v45 = vmul.f32 %v311_v34, %v2264_v37  ;;  %v320_v46 = vrot.slane %v312_v38, 2  ;;  %v321_v47 = vrot.slane %v314_v39, 2  ;;  %v336_v53 = vmul.f32 %v334_v33, %v2261_v36  ;;  %s1841_s8 = sld [smem:[#allocation2 + $0x14]] }
  0x2d   : > { %220 = vrot.lane.b32.xlu0 %v215_v19, %s2116_s24  ;;  %v343_v48 = vrot.slane %v335_v41, 2  ;;  %v344_v49 = vrot.slane %v337_v42, 2  ;;  %v323_v50 = vrot.slane %v313_v44, 2  ;;  %v338_v54 = vmul.f32 %v334_v33, %v2264_v37  ;;  %s1844_s9 = sld [smem:[#allocation2 + $0x17]] }
  0x2e   : > { %v324_v51 = vrot.slane %v315_v45, 2  ;;  %v322_v52 = vsel %vm304_vm1, %v320_v46, %v321_v47  ;;  %v346_v57 = vrot.slane %v336_v53, 2  ;;  %v366_v59 = vstv %s1829_s27  ;;  %s1847_s10 = sld [smem:[#allocation2 + $0x1a]] }
  0x2f   : > { %v345_v55 = vsel %vm304_vm1, %v343_v48, %v344_v49  ;;  %v347_v58 = vrot.slane %v338_v54, 2  ;;  %v403_v60 = vstv %s1832_s28  ;;  %v368_v62 = vmul.f32 %v366_v59, %v2230_v8  ;;  %s1846_s11 = sld [smem:[#allocation2 + $0x19]] }
  0x30   : > { %v325_v56 = vsel %vm304_vm1, %v323_v50, %v324_v51  ;;  %v367_v63 = vmul.f32 %v366_v59, %v2216_v0  ;;  %v404_v1 = vmul.f32 %v403_v60, %v2220_v2  ;;  %v406_v4 = vmul.f32 %v403_v60, %v2223_v3  ;;  %s1851_s17 = sld [smem:[#allocation2 + $0x1c]] }
  0x31   : > { %v348_v61 = vsel %vm304_vm1, %v346_v57, %v347_v58  ;;  %v379_v7 = vstv %s1830_s29  ;;  %v426_v9 = vstv %s1833_s30  ;;  %v405_v13 = vmul.f32 %v403_v60, %v2236_v11  ;;  %s1854_s25 = sld [smem:[#allocation2 + $0x1f]] }
  0x32   : > { %270 = vrot.lane.b32.xlu2 %v267_v35, %s2116_s24  ;;  %v412_v5 = vrot.slane %v404_v1, 1  ;;  %v413_v6 = vrot.slane %v406_v4, 1  ;;  %v380_v10 = vmul.f32 %v379_v7, %v2216_v0  ;;  %v407_v14 = vmul.f32 %v403_v60, %v2239_v12  ;;  %s1852_s26 = sld [smem:[#allocation2 + $0x1d]] }
  0x33   : > { %v381_v16 = vmul.f32 %v379_v7, %v2230_v8  ;;  %v428_v17 = vmul.f32 %v426_v9, %v2236_v11  ;;  %v430_v18 = vmul.f32 %v426_v9, %v2239_v12  ;;  %v427_v19 = vmul.f32 %v426_v9, %v2220_v2  ;;  %s1855_s27 = sld [smem:[#allocation2 + $0x20]] }
  0x34   : > { %293 = vrot.lane.b32.xlu1 %v290_v40, %s2115_s20  ;;  %v414_v15 = vsel %vm246_vm0, %v412_v5, %v413_v6  ;;  %v429_v20 = vmul.f32 %v426_v9, %v2223_v3  ;;  %v415_v21 = vrot.slane %v405_v13, 1  ;;  %v416_v22 = vrot.slane %v407_v14, 1  ;;  %s1858_s28 = sld [smem:[#allocation2 + $0x23]] }
  0x35   : > { %291 = vrot.lane.b32.xlu0 %v287_v43, %s2115_s20  ;;  %v438_v23 = vrot.slane %v428_v17, 1  ;;  %v439_v24 = vrot.slane %v430_v18, 1  ;;  %v435_v25 = vrot.slane %v427_v19, 1  ;;  %v483_v27 = vstv %s1836_s4  ;;  %s1857_s29 = sld [smem:[#allocation2 + $0x22]] }
  0x36   : > { %v436_v26 = vrot.slane %v429_v20, 1  ;;  %v460_v28 = vstv %s1835_s5  ;;  %v417_v31 = vsel %vm246_vm0, %v415_v21, %v416_v22  ;;  %v484_v35 = vmul.f32 %v483_v27, %v2254_v29  ;;  %s2389_s30 = sld [smem:[#allocation2]] }
  0x37   : > { %v461_v32 = vmul.f32 %v460_v28, %v2254_v29  ;;  %v463_v33 = vmul.f32 %v460_v28, %v2257_v30  ;;  %v440_v34 = vsel %vm246_vm0, %v438_v23, %v439_v24  ;;  %v486_v38 = vmul.f32 %v483_v27, %v2257_v30  ;;  %s2392_s4 = sld [smem:[#allocation2 + $0x3]] }
  0x38   : > { %v437_v39 = vsel %vm246_vm0, %v435_v25, %v436_v26  ;;  %v462_v40 = vmul.f32 %v460_v28, %v2261_v36  ;;  %v464_v41 = vmul.f32 %v460_v28, %v2264_v37  ;;  %v492_v44 = vrot.slane %v484_v35, 2  ;;  %s2402_s5 = sld [smem:[#allocation5]] }
  0x39   : > { %v469_v42 = vrot.slane %v461_v32, 2  ;;  %v470_v43 = vrot.slane %v463_v33, 2  ;;  %v493_v45 = vrot.slane %v486_v38, 2  ;;  %v485_v49 = vmul.f32 %v483_v27, %v2261_v36 }
  0x3a   : > { %326 = vrot.lane.b32.xlu2 %v322_v52, %s2116_s24  ;;  %v472_v46 = vrot.slane %v462_v40, 2  ;;  %v473_v47 = vrot.slane %v464_v41, 2  ;;  %v487_v50 = vmul.f32 %v483_v27, %v2264_v37  ;;  %v529_v1 = vstv %s1841_s8  ;;  %s2418_s8 = sld [smem:[#allocation2 + $0x6]] }
  0x3b   : > { %v471_v48 = vsel %vm304_vm1, %v469_v42, %v470_v43  ;;  %v494_v51 = vsel %vm304_vm1, %v492_v44, %v493_v45  ;;  %v495_v53 = vrot.slane %v485_v49, 2  ;;  %v576_v4 = vstv %s1844_s9  ;;  %s2430_s9 = sld [smem:[#allocation2 + $0x26]] }
  0x3c   : > { %349 = vrot.lane.b32.xlu1 %v345_v55, %s2115_s20  ;;  %v474_v52 = vsel %vm304_vm1, %v472_v46, %v473_v47  ;;  %v496_v54 = vrot.slane %v487_v50, 2  ;;  %v516_v55 = vstv %s1840_s6  ;;  %v530_v5 = vmul.f32 %v529_v1, %v2216_v0  ;;  %s2409_s6 = sld [smem:[#allocation2 + $0x25]] }
  0x3d   : > { %328 = vrot.lane.b32.xlu0 %v325_v56, %s2116_s24  ;;  %v553_v56 = vstv %s1843_s7  ;;  %v518_v58 = vmul.f32 %v516_v55, %v2230_v8  ;;  %v517_v59 = vmul.f32 %v516_v55, %v2216_v0  ;;  %v578_v13 = vmul.f32 %v576_v4, %v2236_v11  ;;  %s1865_s7 = sld [smem:[#allocation2 + $0x28]] }
  0x3e   : > { %v497_v57 = vsel %vm304_vm1, %v495_v53, %v496_v54  ;;  %v554_v60 = vmul.f32 %v553_v56, %v2220_v2  ;;  %v555_v6 = vmul.f32 %v553_v56, %v2236_v11  ;;  %v557_v7 = vmul.f32 %v553_v56, %v2239_v12 }
  0x3f   : > { %v580_v14 = vmul.f32 %v576_v4, %v2239_v12  ;;  %v588_v19 = vrot.slane %v578_v13, 1  ;;  %v633_v23 = vstv %s1847_s10  ;;  %v610_v24 = vstv %s1846_s11  ;;  %s1866_s10 = sld [smem:[#allocation2 + $0x29]] }
  0x40   : > { %v565_v17 = vrot.slane %v555_v6, 1  ;;  %v566_v18 = vrot.slane %v557_v7, 1  ;;  %v611_v26 = vmul.f32 %v610_v24, %v2254_v29  ;;  %v613_v27 = vmul.f32 %v610_v24, %v2257_v30  ;;  %s2449_s11 = sld [smem:[#allocation2 + $0x2c]] }
  0x41   : > { %v589_v20 = vrot.slane %v580_v14, 1  ;;  %v636_v32 = vmul.f32 %v633_v23, %v2257_v30  ;;  %v614_v35 = vmul.f32 %v610_v24, %v2264_v37  ;;  %v635_v45 = vmul.f32 %v633_v23, %v2261_v36 }
  0x42   : > { %351 = vrot.lane.b32.xlu2 %v348_v61, %s2115_s20  ;;  %v556_v61 = vmul.f32 %v553_v56, %v2223_v3  ;;  %v567_v25 = vsel %vm246_vm0, %v565_v17, %v566_v18  ;;  %v619_v38 = vrot.slane %v611_v26, 2  ;;  %v637_v46 = vmul.f32 %v633_v23, %v2264_v37 }
  0x43   : > { %v590_v28 = vsel %vm246_vm0, %v588_v19, %v589_v20  ;;  %v643_v41 = vrot.slane %v636_v32, 2  ;;  %v623_v43 = vrot.slane %v614_v35, 2  ;;  %v645_v49 = vrot.slane %v635_v45, 2 }
  0x44   : > { %373 = vrot.lane.b32.xlu1 %v368_v62, %s2116_s24  ;;  %v562_v62 = vrot.slane %v554_v60, 1  ;;  %v646_v50 = vrot.slane %v637_v46, 2  ;;  %v241_v46 = vstv %s2392_s4  ;;  %s1876_s4 = sld [smem:[#allocation2 + $0x31]] }
  0x45   : > { %371 = vrot.lane.b32.xlu0 %v367_v63, %s2116_s24  ;;  %v563_v63 = vrot.slane %v556_v61, 1  ;;  %v679_v61 = vstv %s1852_s26  ;;  %s2473_s26 = sld [smem:[#allocation2 + $0xc]] }
  0x46   : > { %v647_v53 = vsel %vm304_vm1, %v645_v49, %v646_v50  ;;  %v681_v6 = vmul.f32 %v679_v61, %v2230_v8 }
  0x47   : > { %v564_v9 = vsel %vm246_vm0, %v562_v62, %v563_v63  ;;  %v726_v62 = vstv %s1855_s27  ;;  %v680_v63 = vmul.f32 %v679_v61, %v2216_v0  ;;  %v816_v61 = vstv %s2409_s6  ;;  %s188_s27 = sand.u32 1, %s2103_s13  }
  0x48   : > { %v728_v7 = vmul.f32 %v726_v62, %v2236_v11  ;;  %v729_v13 = vmul.f32 %v726_v62, %v2223_v3 }
  0x4a   : > { %384 = vrot.lane.b32.xlu2 %v380_v10, %s2115_s20  ;;  %v531_v10 = vmul.f32 %v529_v1, %v2230_v8  ;;  %v738_v17 = vrot.slane %v728_v7, 1  ;;  %v736_v20 = vrot.slane %v729_v13, 1 }
  0x4c   : > { %418 = vrot.lane.b32.xlu1 %v414_v15, %s2116_s24  ;;  %v577_v15 = vmul.f32 %v576_v4, %v2220_v2 }
  0x4d   : > { %386 = vrot.lane.b32.xlu0 %v381_v16, %s2115_s20  ;;  %v579_v16 = vmul.f32 %v576_v4, %v2223_v3 }
  0x4e   : > { %v585_v21 = vrot.slane %v577_v15, 1 }
  0x4f   : > { %v586_v22 = vrot.slane %v579_v16, 1 }
  0x51   : > { %v587_v33 = vsel %vm246_vm0, %v585_v21, %v586_v22  ;;  %v783_v21 = vstv %s1858_s28  ;;  %v760_v22 = vstv %s1857_s29  ;;  %s2481_s28 = sld [smem:[#allocation5 + $0x1]]  ;;  %s1930_s29 = smul.u32 40, %s188_s27 }
  0x52   : > { %420 = vrot.lane.b32.xlu2 %v417_v31, %s2116_s24  ;;  %v634_v31 = vmul.f32 %v633_v23, %v2254_v29  ;;  %v762_v32 = vmul.f32 %v760_v22, %v2261_v36  ;;  %v787_v49 = vmul.f32 %v783_v21, %v2264_v37 }
  0x53   : > { %s2509_s6 = scalar_lea.vmem [#allocation7], %s1930_s29  ;;  %s2602_s29 = sld [smem:[#allocation2 + $0x18]] }
  0x54   : > { %443 = vrot.lane.b32.xlu1 %v440_v34, %s2115_s20  ;;  %v612_v34 = vmul.f32 %v610_v24, %v2261_v36  ;;  %v642_v40 = vrot.slane %v634_v31, 2  ;;  %v761_v24 = vmul.f32 %v760_v22, %v2254_v29 }
  0x55   : > { %441 = vrot.lane.b32.xlu0 %v437_v39, %s2115_s20  ;;  %v620_v39 = vrot.slane %v613_v27, 2  ;;  %v784_v27 = vmul.f32 %v783_v21, %v2254_v29 }
  0x56   : > { %v622_v42 = vrot.slane %v612_v34, 2  ;;  %v644_v47 = vsel %vm304_vm1, %v642_v40, %v643_v41  ;;  %v769_v34 = vrot.slane %v761_v24, 2 }
  0x57   : > { %v621_v44 = vsel %vm304_vm1, %v619_v38, %v620_v39  ;;  %v792_v39 = vrot.slane %v784_v27, 2  ;;  %v829_v27 = vstv %s2430_s9  ;;  %s2542_s9 = sld [smem:[#allocation2 + $0x35]] }
  0x5a   : > { %475 = vrot.lane.b32.xlu2 %v471_v48, %s2116_s24  ;;  %v624_v48 = vsel %vm304_vm1, %v622_v42, %v623_v43  ;;  %v772_v42 = vrot.slane %v762_v32, 2  ;;  %v876_v32 = vstv %s1866_s10  ;;  %s2545_s10 = sld [smem:[#allocation2 + $0x34]] }
  0x5c   : > { %498 = vrot.lane.b32.xlu1 %v494_v51, %s2115_s20  ;;  %v666_v51 = vstv %s1851_s17  ;;  %s1868_s17 = sld [smem:[#allocation2 + $0x2b]] }
  0x5d   : > { %477 = vrot.lane.b32.xlu0 %v474_v52, %s2116_s24  ;;  %v703_v52 = vstv %s1854_s25  ;;  %v668_v54 = vmul.f32 %v666_v51, %v2230_v8  ;;  %v667_v55 = vmul.f32 %v666_v51, %v2216_v0  ;;  %s2465_s25 = sld [smem:[#allocation2 + $0x9]] }
  0x5e   : > { %v704_v56 = vmul.f32 %v703_v52, %v2220_v2  ;;  %v705_v1 = vmul.f32 %v703_v52, %v2236_v11  ;;  %v707_v4 = vmul.f32 %v703_v52, %v2239_v12 }
  0x60   : > { %v715_v14 = vrot.slane %v705_v1, 1  ;;  %v716_v15 = vrot.slane %v707_v4, 1  ;;  %v853_v4 = vstv %s1865_s7  ;;  %s2523_s7 = sld [smem:[#allocation2 + $0x2f]] }
  0x62   : > { %500 = vrot.lane.b32.xlu2 %v497_v57, %s2115_s20  ;;  %v706_v57 = vmul.f32 %v703_v52, %v2223_v3  ;;  %v717_v23 = vsel %vm246_vm0, %v715_v14, %v716_v15  ;;  %v854_v14 = vmul.f32 %v853_v4, %v2220_v2  ;;  %v856_v15 = vmul.f32 %v853_v4, %v2223_v3 }
  0x64   : > { %523 = vrot.lane.b32.xlu1 %v518_v58, %s2116_s24  ;;  %v713_v60 = vrot.slane %v706_v57, 1  ;;  %v796_v57 = vrot.slane %v787_v49, 2 }
  0x65   : > { %521 = vrot.lane.b32.xlu0 %v517_v59, %s2116_s24  ;;  %v712_v59 = vrot.slane %v704_v56, 1 }
  0x6a   : > { %534 = vrot.lane.b32.xlu2 %v530_v5, %s2115_s20  ;;  %v714_v5 = vsel %vm246_vm0, %v712_v59, %v713_v60 }
  0x6c   : > { %568 = vrot.lane.b32.xlu1 %v564_v9, %s2116_s24  ;;  %v730_v9 = vmul.f32 %v726_v62, %v2239_v12 }
  0x6d   : > { %536 = vrot.lane.b32.xlu0 %v531_v10, %s2115_s20  ;;  %v727_v10 = vmul.f32 %v726_v62, %v2220_v2 }
  0x6e   : > { %v739_v18 = vrot.slane %v730_v9, 1  ;;  %v818_v9 = vmul.f32 %v816_v61, %v2230_v8 }
  0x6f   : > { %v735_v19 = vrot.slane %v727_v10, 1  ;;  %v817_v10 = vmul.f32 %v816_v61, %v2216_v0  ;;  %v910_v61 = vstv %s1868_s17  ;;  %s2568_s17 = sld [smem:[#allocation2 + $0x15]] }
  0x70   : > { %v740_v26 = vsel %vm246_vm0, %v738_v17, %v739_v18  ;;  %v299_v17 = vstv %s2418_s8  ;;  %s1877_s8 = sld [smem:[#allocation2 + $0x32]] }
  0x71   : > { %v737_v31 = vsel %vm246_vm0, %v735_v19, %v736_v20 }
  0x72   : > { %570 = vrot.lane.b32.xlu2 %v567_v25, %s2116_s24  ;;  %v763_v25 = vmul.f32 %v760_v22, %v2257_v30 }
  0x74   : > { %593 = vrot.lane.b32.xlu1 %v590_v28, %s2115_s20  ;;  %v786_v28 = vmul.f32 %v783_v21, %v2257_v30  ;;  %v770_v35 = vrot.slane %v763_v25, 2  ;;  %v862_v25 = vrot.slane %v854_v14, 1 }
  0x75   : > { %591 = vrot.lane.b32.xlu0 %v587_v33, %s2115_s20  ;;  %v764_v33 = vmul.f32 %v760_v22, %v2264_v37  ;;  %v301_v22 = vmul.f32 %v299_v17, %v2257_v30 }
  0x76   : > { %v793_v40 = vrot.slane %v786_v28, 2 }
  0x77   : > { %v773_v43 = vrot.slane %v764_v33, 2  ;;  %v830_v33 = vmul.f32 %v829_v27, %v2216_v0 }
  0x78   : > { %v794_v50 = vsel %vm304_vm1, %v792_v39, %v793_v40  ;;  %v855_v39 = vmul.f32 %v853_v4, %v2236_v11  ;;  %v857_v40 = vmul.f32 %v853_v4, %v2239_v12  ;;  %v911_v4 = vmul.f32 %v910_v61, %v2254_v29 }
  0x79   : > { %v774_v52 = vsel %vm304_vm1, %v772_v42, %v773_v43  ;;  %v306_v43 = vrot.slane %v301_v22, 2 }
  0x7a   : > { %625 = vrot.lane.b32.xlu2 %v621_v44, %s2116_s24  ;;  %v209_v44 = vstv %s2389_s30  ;;  %v865_v49 = vrot.slane %v855_v39, 1  ;;  %s2499_s30 = sld [smem:[#allocation2 + $0x2e]] }
  0x7b   : > { %v210_v51 = vmul.f32 %v209_v44, %v2216_v0 }
  0x7c   : > { %648 = vrot.lane.b32.xlu1 %v644_v47, %s2115_s20  ;;  %v771_v47 = vsel %vm304_vm1, %v769_v34, %v770_v35 }
  0x7d   : > { %627 = vrot.lane.b32.xlu0 %v624_v48, %s2116_s24  ;;  %v785_v48 = vmul.f32 %v783_v21, %v2261_v36  ;;  %v300_v21 = vmul.f32 %v299_v17, %v2254_v29  ;;  %v912_v17 = vmul.f32 %v910_v61, %v2261_v36 }
  0x7f   : > { %v795_v56 = vrot.slane %v785_v48, 2  ;;  %v305_v42 = vrot.slane %v300_v21, 2 }
  0x82   : > { %650 = vrot.lane.b32.xlu2 %v647_v53, %s2115_s20  ;;  %v207_v53 = vstv %s2402_s5  ;;  %s2507_s5 = sld [smem:[#allocation2 + $0xf]] }
  0x83   : > { %v211_v60 = vadd.f32 %v210_v51, %v207_v53  ;;  %v307_v51 = vsel %vm304_vm1, %v305_v42, %v306_v43 }
  0x84   : > { %673 = vrot.lane.b32.xlu1 %v668_v54, %s2116_s24  ;;  %v2372_v58 = vpop.permute.xlu2 %268  ;;  %v242_v54 = vmul.f32 %v241_v46, %v2220_v2 }
  0x85   : > { %671 = vrot.lane.b32.xlu0 %v667_v55, %s2116_s24  ;;  %v243_v55 = vmul.f32 %v241_v46, %v2223_v3  ;;  %v877_v46 = vmul.f32 %v876_v32, %v2220_v2 }
  0x87   : > { %v248_v1 = vrot.slane %v243_v55, 1 }
  0x8a   : > { %684 = vrot.lane.b32.xlu2 %v680_v63, %s2115_s20  ;;  %v247_v63 = vrot.slane %v242_v54, 1 }
  0x8c   : > { %718 = vrot.lane.b32.xlu1 %v714_v5, %s2116_s24  ;;  %v2386_v16 = vpop.permute.xlu2 %270  ;;  %v249_v19 = vsel %vm246_vm0, %v247_v63, %v248_v1 }
  0x8d   : > { %686 = vrot.lane.b32.xlu0 %v681_v6, %s2115_s20  ;;  %v797_v6 = vsel %vm304_vm1, %v795_v56, %v796_v57  ;;  %v272_v28 = vsel %vm222_vm2, %v2372_v58, %v2386_v16  ;;  %v878_v58 = vmul.f32 %v876_v32, %v2236_v11  ;;  %v880_v16 = vmul.f32 %v876_v32, %v2239_v12 }
  0x8e   : > { %v885_v56 = vrot.slane %v877_v46, 1 }
  0x8f   : > { %v888_v53 = vrot.slane %v878_v58, 1  ;;  %v889_v54 = vrot.slane %v880_v16, 1 }
  0x92   : > { %720 = vrot.lane.b32.xlu2 %v717_v23, %s2116_s24 }
  0x94   : > { %743 = vrot.lane.b32.xlu1 %v740_v26, %s2115_s20  ;;  %v2406_v38 = vpop.permute.xlu2 %326  ;;  %v863_v26 = vrot.slane %v856_v15, 1 }
  0x95   : > { %741 = vrot.lane.b32.xlu0 %v737_v31, %s2115_s20 }
  0x96   : > { %v233_v41 = vpop.permute.xlu1 %232  ;;  %v864_v44 = vsel %vm246_vm0, %v862_v25, %v863_v26 }
  0x97   : > { %v219_v45 = vpop.permute.xlu0 %218 }
  0x9a   : > { %775 = vrot.lane.b32.xlu2 %v771_v47, %s2116_s24  ;;  %v879_v47 = vmul.f32 %v876_v32, %v2223_v3  ;;  %v392_v32 = vstv %s2473_s26  ;;  %s2591_s26 = sld [smem:[#allocation2 + $0x37]] }
  0x9c   : > { %798 = vrot.lane.b32.xlu1 %v794_v50, %s2115_s20  ;;  %v2426_v59 = vpop.permute.xlu2 %351  ;;  %v866_v50 = vrot.slane %v857_v40, 1  ;;  %v886_v57 = vrot.slane %v879_v47, 1 }
  0x9d   : > { %777 = vrot.lane.b32.xlu0 %v774_v52, %s2116_s24 }
  0x9e   : > { %v235_v62 = vpop.permute.xlu1 %234  ;;  %v867_v1 = vsel %vm246_vm0, %v865_v49, %v866_v50  ;;  %v887_v15 = vsel %vm246_vm0, %v885_v56, %v886_v57  ;;  %v966_v49 = vstv %s2499_s30  ;;  %s2622_s30 = sld [smem:[#allocation2 + $0x38]] }
  0x9f   : > { %v221_v5 = vpop.permute.xlu0 %220  ;;  %v237_v18 = vsel %vm236_vm3, %v233_v41, %v235_v62 }
  0xa0   : > { %v223_v7 = vsel %vm222_vm2, %v219_v45, %v221_v5  ;;  %v831_v45 = vmul.f32 %v829_v27, %v2230_v8  ;;  %v913_v5 = vmul.f32 %v910_v61, %v2257_v30 }
  0xa1   : > { %v225_v13 = vadd.f32 %v223_v7, %v211_v60  ;;  %v933_v60 = vstv %s2449_s11  ;;  %s2559_s11 = sld [smem:[#allocation2 + $0x12]] }
  0xa2   : > { %800 = vrot.lane.b32.xlu2 %v797_v6, %s2115_s20  ;;  %v920_v21 = vrot.slane %v913_v5, 2  ;;  %v935_v39 = vmul.f32 %v933_v60, %v2261_v36  ;;  %v937_v40 = vmul.f32 %v933_v60, %v2264_v37 }
  0xa3   : > { %v239_v20 = vadd.f32 %v237_v18, %v225_v13  ;;  %v936_v13 = vmul.f32 %v933_v60, %v2257_v30 }
  0xa4   : > { %823 = vrot.lane.b32.xlu1 %v818_v9, %s2116_s24  ;;  %v2445_v23 = vpop.permute.xlu2 %384  ;;  %v890_v9 = vsel %vm246_vm0, %v888_v53, %v889_v54  ;;  %v945_v16 = vrot.slane %v935_v39, 2  ;;  %v946_v46 = vrot.slane %v937_v40, 2  ;;  %v1003_v54 = vstv %s1876_s4  ;;  %s1888_s4 = sld [smem:[#allocation2 + $0x3b]] }
  0xa5   : > { %821 = vrot.lane.b32.xlu0 %v817_v10, %s2116_s24  ;;  %v251_v24 = vadd.f32 %v249_v19, %v239_v20  ;;  %v934_v10 = vmul.f32 %v933_v60, %v2254_v29  ;;  %v362_v19 = vstv %s2465_s25  ;;  %v919_v20 = vrot.slane %v911_v4, 2  ;;  %s2575_s25 = sld [smem:[#allocation5 + $0x2]] }
  0xa6   : > { %v294_v31 = vpop.permute.xlu1 %293  ;;  %v943_v25 = vrot.slane %v936_v13, 2  ;;  %v363_v27 = vmul.f32 %v362_v19, %v2216_v0  ;;  %v947_v57 = vsel %vm304_vm1, %v945_v16, %v946_v46  ;;  %v1004_v4 = vmul.f32 %v1003_v54, %v2220_v2 }
  0xa7   : > { %v292_v34 = vpop.permute.xlu0 %291  ;;  %v274_v35 = vadd.f32 %v272_v28, %v251_v24  ;;  %v942_v24 = vrot.slane %v934_v10, 2  ;;  %v922_v28 = vrot.slane %v912_v17, 2  ;;  %v1006_v5 = vmul.f32 %v1003_v54, %v2223_v3 }
  0xa8   : > { %v295_v41 = vsel %vm236_vm3, %v292_v34, %v294_v31  ;;  %v1012_v13 = vrot.slane %v1004_v4, 1  ;;  %v2594_v4 = vld [vmem:[%s2213_s19] sm:$0xff] }
  0xa9   : > { %v297_v48 = vadd.f32 %v295_v41, %v274_v35  ;;  %v921_v35 = vsel %vm304_vm1, %v919_v20, %v920_v21  ;;  %v360_v41 = vstv %s2481_s28  ;;  %v944_v42 = vsel %vm304_vm1, %v942_v24, %v943_v25  ;;  %s1887_s28 = sld [smem:[#allocation2 + $0x3a]] }
  0xaa   : > { %834 = vrot.lane.b32.xlu2 %v830_v33, %s2115_s20  ;;  %v364_v58 = vadd.f32 %v363_v27, %v360_v41  ;;  %v1005_v21 = vmul.f32 %v1003_v54, %v2236_v11 }
  0xab   : > { %v309_v63 = vadd.f32 %v307_v51, %v297_v48 }
  0xac   : > { %868 = vrot.lane.b32.xlu1 %v864_v44, %s2116_s24  ;;  %v2469_v52 = vpop.permute.xlu2 %420  ;;  %v393_v44 = vmul.f32 %v392_v32, %v2220_v2 }
  0xad   : > { %836 = vrot.lane.b32.xlu0 %v831_v45, %s2115_s20  ;;  %v394_v45 = vmul.f32 %v392_v32, %v2223_v3 }
  0xae   : > { %v350_v55 = vpop.permute.xlu1 %349  ;;  %v397_v51 = vrot.slane %v393_v44, 1 }
  0xaf   : > { %v329_v62 = vpop.permute.xlu0 %328  ;;  %v353_v14 = vsel %vm236_vm3, %v350_v55, %v2426_v59  ;;  %v398_v53 = vrot.slane %v394_v45, 1 }
  0xb0   : > { %v330_v6 = vsel %vm222_vm2, %v2406_v38, %v329_v62  ;;  %v914_v38 = vmul.f32 %v910_v61, %v2264_v37  ;;  %v968_v61 = vmul.f32 %v966_v49, %v2230_v8  ;;  %v449_v62 = vstv %s2507_s5  ;;  %s2650_s5 = sld [smem:[#allocation2 + $0x3e]] }
  0xb1   : > { %v332_v7 = vadd.f32 %v330_v6, %v309_v63  ;;  %v399_v6 = vsel %vm246_vm0, %v397_v51, %v398_v53 }
  0xb2   : > { %870 = vrot.lane.b32.xlu2 %v867_v1, %s2116_s24  ;;  %v923_v31 = vrot.slane %v914_v38, 2  ;;  %v967_v1 = vmul.f32 %v966_v49, %v2216_v0  ;;  %v1026_v38 = vstv %s1877_s8  ;;  %s2673_s8 = sld [smem:[#allocation2 + $0x1b]] }
  0xb3   : > { %v355_v18 = vadd.f32 %v353_v14, %v332_v7  ;;  %v450_v7 = vmul.f32 %v449_v62, %v2254_v29  ;;  %v1013_v14 = vrot.slane %v1006_v5, 1  ;;  %v1030_v32 = vmul.f32 %v1026_v38, %v2239_v12 }
  0xb4   : > { %893 = vrot.lane.b32.xlu1 %v890_v9, %s2115_s20  ;;  %v2496_v22 = vpop.permute.xlu2 %475  ;;  %v924_v43 = vsel %vm304_vm1, %v922_v28, %v923_v31 }
  0xb5   : > { %v356_v59 = vmax.f32 %v355_v18, 0.0  ;;  %891 = vrot.lane.b32.xlu0 %v887_v15, %s2115_s20  ;;  %v979_v15 = vstv %s2523_s7  ;;  %v454_v20 = vrot.slane %v450_v7, 2  ;;  %v1014_v31 = vsel %vm246_vm0, %v1012_v13, %v1013_v14  ;;  %s2653_s7 = sld [smem:[#allocation2 + $0x3d]] }
  0xb6   : > { %v374_v26 = vpop.permute.xlu1 %373  ;;  %v980_v18 = vmul.f32 %v979_v15, %v2216_v0  ;;  %v1028_v0 = vmul.f32 %v1026_v38, %v2236_v11 }
  0xb7   : > { %v357_v33 = vpack.c.bf16 %v356_v59, %v356_v59  ;;  %v372_v34 = vpop.permute.xlu0 %371  ;;  %v1007_v59 = vmul.f32 %v1003_v54, %v2239_v12  ;;  %v1039_v12 = vrot.slane %v1030_v32, 1 }
  0xb8   : > { %v375_v47 = vsel %vm222_vm2, %v372_v34, %v374_v26  ;;  %v981_v26 = vmul.f32 %v979_v15, %v2230_v8  ;;  %v1029_v34 = vmul.f32 %v1026_v38, %v2223_v3  ;;  %v1015_v8 = vrot.slane %v1005_v21, 1 }
  0xb9   : > { %358 = vst [vmem:[%s2509_s6] sm:$0xf] %v357_v33  ;;  %v377_v55 = vadd.f32 %v375_v47, %v364_v58  ;;  %v1027_v33 = vmul.f32 %v1026_v38, %v2220_v2  ;;  %v1038_v2 = vrot.slane %v1028_v0, 1  ;;  %v510_v38 = vstv %s2575_s25  ;;  %s2719_s25 = sld [smem:[#allocation2 + $0x21]] }
  0xba   : > { %925 = vrot.lane.b32.xlu2 %v921_v35, %s2116_s24  ;;  %v1016_v35 = vrot.slane %v1007_v59, 1  ;;  %v1036_v41 = vrot.slane %v1029_v34, 1  ;;  %v2612_v59 = vld [vmem:[%s2213_s19 + $0x10] sm:$0x1] }
  0xbb   : > { %v1035_v3 = vrot.slane %v1027_v33, 1  ;;  %v1153_v33 = vstv %s1887_s28  ;;  %s1899_s28 = sld [smem:[#allocation2 + $0x44]] }
  0xbc   : > { %948 = vrot.lane.b32.xlu1 %v944_v42, %s2115_s20  ;;  %v2519_v48 = vpop.permute.xlu2 %500  ;;  %v1083_v42 = vstv %s2542_s9  ;;  %v1017_v58 = vsel %vm246_vm0, %v1015_v8, %v1016_v35  ;;  %s2682_s9 = sld [smem:[#allocation2 + $0x1e]] }
  0xbd   : > { %927 = vrot.lane.b32.xlu0 %v924_v43, %s2116_s24  ;;  %v1060_v43 = vstv %s2545_s10  ;;  %v1084_v51 = vmul.f32 %v1083_v42, %v2254_v29  ;;  %v1086_v53 = vmul.f32 %v1083_v42, %v2257_v30  ;;  %v1085_v15 = vmul.f32 %v1083_v42, %v2261_v36  ;;  %s2689_s10 = sld [smem:[#allocation5 + $0x3]] }
  0xbe   : > { %v419_v50 = vpop.permute.xlu1 %418  ;;  %v1061_v16 = vmul.f32 %v1060_v43, %v2254_v29  ;;  %v1063_v46 = vmul.f32 %v1060_v43, %v2257_v30 }
  0xbf   : > { %v387_v56 = vpop.permute.xlu0 %386  ;;  %v422_v24 = vsel %vm222_vm2, %v419_v50, %v2469_v52  ;;  %v1040_v50 = vsel %vm246_vm0, %v1038_v2, %v1039_v12  ;;  %v599_v12 = vstv %s2602_s29  ;;  %s2752_s29 = sld [smem:[#allocation2 + $0x47]] }
  0xc0   : > { %v388_v60 = vsel %vm236_vm3, %v2445_v23, %v387_v56  ;;  %v451_v23 = vmul.f32 %v449_v62, %v2257_v30  ;;  %v1062_v56 = vmul.f32 %v1060_v43, %v2261_v36  ;;  %v1070_v62 = vrot.slane %v1063_v46, 2 }
  0xc1   : > { %v390_v63 = vadd.f32 %v388_v60, %v377_v55  ;;  %v1037_v55 = vsel %vm246_vm0, %v1035_v3, %v1036_v41  ;;  %v512_v60 = vstv %s2559_s11  ;;  %s2711_s11 = sld [smem:[#allocation2 + $0x40]] }
  0xc2   : > { %950 = vrot.lane.b32.xlu2 %v947_v57, %s2115_s20  ;;  %v455_v27 = vrot.slane %v451_v23, 2  ;;  %v1064_v57 = vmul.f32 %v1060_v43, %v2264_v37  ;;  %v513_v5 = vmul.f32 %v2594_v4, %v512_v60  ;;  %v542_v23 = vstv %s2568_s17  ;;  %v2660_v60 = vld [vmem:[%s2213_s19 + $0x18] sm:$0x1]  ;;  %s1898_s17 = sld [smem:[#allocation2 + $0x43]] }
  0xc3   : > { %v401_v10 = vadd.f32 %v399_v6, %v390_v63  ;;  %v1093_v63 = vrot.slane %v1086_v53, 2  ;;  %v1072_v6 = vrot.slane %v1062_v56, 2  ;;  %v1176_v53 = vstv %s1888_s4  ;;  %s2769_s4 = sld [smem:[#allocation2 + $0x24]] }
  0xc4   : > { %973 = vrot.lane.b32.xlu1 %v968_v61, %s2116_s24  ;;  %v2538_v9 = vpop.permute.xlu2 %534  ;;  %v456_v39 = vsel %vm304_vm1, %v454_v20, %v455_v27  ;;  %v1069_v61 = vrot.slane %v1061_v16, 2  ;;  %v1073_v7 = vrot.slane %v1064_v57, 2  ;;  %v2608_v20 = vld [vmem:[%s2213_s19] sm:$0xfe]  ;;  %v514_v36 = vadd.f32 %v513_v5, %v510_v38  ;;  %v2656_v57 = vld [vmem:[%s2213_s19 + $0x8] sm:$0xfe] }
  0xc5   : > { %971 = vrot.lane.b32.xlu0 %v967_v1, %s2116_s24  ;;  %v424_v28 = vadd.f32 %v422_v24, %v401_v10  ;;  %v543_v21 = vmul.f32 %v2608_v20, %v542_v23  ;;  %v544_v24 = vmul.f32 %v2612_v59, %v542_v23  ;;  %v1154_v41 = vmul.f32 %v2608_v20, %v1153_v33 }
  0xc6   : > { %v444_v17 = vpop.permute.xlu1 %443  ;;  %v1071_v14 = vsel %vm304_vm1, %v1069_v61, %v1070_v62  ;;  %v1157_v61 = vmul.f32 %v2660_v60, %v1153_v33  ;;  %v1177_v23 = vmul.f32 %v2608_v20, %v1176_v53 }
  0xc7   : > { %v442_v19 = vpop.permute.xlu0 %441  ;;  %v547_v0 = vrot.slane %v543_v21, 1  ;;  %v548_v32 = vrot.slane %v544_v24, 1 }
  0xc8   : > { %v445_v25 = vsel %vm236_vm3, %v442_v19, %v444_v17  ;;  %v1087_v17 = vmul.f32 %v1083_v42, %v2264_v37  ;;  %v1074_v19 = vsel %vm304_vm1, %v1072_v6, %v1073_v7  ;;  %v1095_v37 = vrot.slane %v1085_v15, 2 }
  0xc9   : > { %v447_v52 = vadd.f32 %v445_v25, %v424_v28  ;;  %v1116_v28 = vstv %s2591_s26  ;;  %v1156_v42 = vmul.f32 %v2612_v59, %v1153_v33  ;;  %v549_v43 = vsel %vm246_vm0, %v547_v0, %v548_v32  ;;  %s2733_s26 = sld [smem:[#allocation2 + $0x41]] }
  0xca   : > { %984 = vrot.lane.b32.xlu2 %v980_v18, %s2115_s20  ;;  %v1096_v25 = vrot.slane %v1087_v17, 2  ;;  %v1117_v3 = vmul.f32 %v2594_v4, %v1116_v28  ;;  %v1178_v6 = vmul.f32 %v2656_v57, %v1176_v53  ;;  %v1180_v7 = vmul.f32 %v2660_v60, %v1176_v53 }
  0xcb   : > { %v458_v44 = vadd.f32 %v456_v39, %v447_v52  ;;  %v2628_v39 = vld [vmem:[%s2213_s19 + $0x8] sm:$0xff]  ;;  %v1185_v21 = vrot.slane %v1177_v23, 1 }
  0xcc   : > { %1018 = vrot.lane.b32.xlu1 %v1014_v31, %s2116_s24  ;;  %v2563_v11 = vpop.permute.xlu2 %570  ;;  %v1097_v8 = vsel %vm304_vm1, %v1095_v37, %v1096_v25  ;;  %v1118_v2 = vmul.f32 %v2628_v39, %v1116_v28  ;;  %v1188_v38 = vrot.slane %v1178_v6, 1  ;;  %v1210_v37 = vstv %s2653_s7  ;;  %s2785_s7 = sld [smem:[#allocation5 + $0x4]] }
  0xcd   : > { %986 = vrot.lane.b32.xlu0 %v981_v26, %s2115_s20 }
  0xce   : > { %v499_v40 = vpop.permute.xlu1 %498 }
  0xcf   : > { %v478_v45 = vpop.permute.xlu0 %477  ;;  %v502_v54 = vsel %vm236_vm3, %v499_v40, %v2519_v48  ;;  %v1092_v48 = vrot.slane %v1084_v51, 2 }
  0xd0   : > { %v479_v47 = vsel %vm222_vm2, %v2496_v22, %v478_v45  ;;  %v2643_v45 = vld [vmem:[%s2213_s19 + $0x10] sm:$0x3] }
  0xd1   : > { %v481_v49 = vadd.f32 %v479_v47, %v458_v44  ;;  %v1094_v18 = vsel %vm304_vm1, %v1092_v48, %v1093_v63  ;;  %v2638_v44 = vld [vmem:[%s2213_s19] sm:$0xfc]  ;;  %v1162_v47 = vrot.slane %v1154_v41, 1  ;;  %v1213_v0 = vmul.f32 %v2643_v45, %v1210_v37 }
  0xd2   : > { %1020 = vrot.lane.b32.xlu2 %v1017_v58, %s2116_s24  ;;  %v601_v58 = vmul.f32 %v2643_v45, %v599_v12 }
  0xd3   : > { %v504_v22 = vadd.f32 %v502_v54, %v481_v49  ;;  %v1163_v49 = vrot.slane %v1156_v42, 1  ;;  %v662_v42 = vstv %s2673_s8  ;;  %s2801_s8 = sld [smem:[#allocation2 + $0x49]] }
  0xd4   : > { %1043 = vrot.lane.b32.xlu1 %v1040_v50, %s2115_s20  ;;  %v2588_v29 = vpop.permute.xlu2 %625  ;;  %v1129_v50 = vstv %s2622_s30  ;;  %v605_v63 = vrot.slane %v601_v58, 2  ;;  %s2755_s30 = sld [smem:[#allocation2 + $0x46]] }
  0xd5   : > { %v505_v30 = vmax.f32 %v504_v22, 0.0  ;;  %1041 = vrot.lane.b32.xlu0 %v1037_v55, %s2115_s20  ;;  %v1130_v54 = vmul.f32 %v2594_v4, %v1129_v50  ;;  %v1155_v22 = vmul.f32 %v2656_v57, %v1153_v33  ;;  %v1131_v48 = vmul.f32 %v2628_v39, %v1129_v50 }
  0xd6   : > { %v524_v1 = vpop.permute.xlu1 %523  ;;  %v1164_v5 = vsel %vm246_vm0, %v1162_v47, %v1163_v49  ;;  %v663_v50 = vmul.f32 %v2594_v4, %v662_v42 }
  0xd7   : > { %v506_v10 = vpack.c.bf16 %v505_v30, %v505_v30  ;;  %v522_v13 = vpop.permute.xlu0 %521 }
  0xd8   : > { %v525_v26 = vsel %vm222_vm2, %v522_v13, %v524_v1  ;;  %v1165_v13 = vrot.slane %v1155_v22, 1 }
  0xd9   : > { %1837 = vst [vmem:[%s2509_s6 + $0x4] sm:$0xf] %v506_v10  ;;  %v527_v34 = vadd.f32 %v525_v26, %v514_v36  ;;  %v1179_v10 = vmul.f32 %v2612_v59, %v1176_v53  ;;  %v1233_v36 = vstv %s2650_s5  ;;  %s2778_s5 = sld [smem:[#allocation2 + $0x27]] }
  0xda   : > { %1075 = vrot.lane.b32.xlu2 %v1071_v14, %s2116_s24  ;;  %v1166_v14 = vrot.slane %v1157_v61, 1 }
  0xdb   : > { %v1186_v24 = vrot.slane %v1179_v10, 1 }
  0xdc   : > { %1098 = vrot.lane.b32.xlu1 %v1094_v18, %s2115_s20  ;;  %v2618_v27 = vpop.permute.xlu2 %650  ;;  %v1189_v18 = vrot.slane %v1180_v7, 1  ;;  %v1167_v28 = vsel %vm246_vm0, %v1165_v13, %v1166_v14  ;;  %v1266_v13 = vstv %s2711_s11  ;;  %s2825_s11 = sld [smem:[#allocation2 + $0x4a]] }
  0xdd   : > { %1077 = vrot.lane.b32.xlu0 %v1074_v19, %s2116_s24 }
  0xde   : > { %v569_v31 = vpop.permute.xlu1 %568 }
  0xdf   : > { %v537_v52 = vpop.permute.xlu0 %536  ;;  %v572_v62 = vsel %vm222_vm2, %v569_v31, %v2563_v11  ;;  %v1211_v31 = vmul.f32 %v2638_v44, %v1210_v37 }
  0xe0   : > { %v538_v35 = vsel %vm236_vm3, %v2538_v9, %v537_v52  ;;  %v600_v9 = vmul.f32 %v2638_v44, %v599_v12  ;;  %v1234_v52 = vmul.f32 %v2638_v44, %v1233_v36  ;;  %v2698_v12 = vld [vmem:[%s2213_s19 + $0x8] sm:$0xfc] }
  0xe1   : > { %v540_v40 = vadd.f32 %v538_v35, %v527_v34  ;;  %v1190_v34 = vsel %vm246_vm0, %v1188_v38, %v1189_v18  ;;  %v1235_v61 = vmul.f32 %v2698_v12, %v1233_v36  ;;  %v1303_v18 = vstv %s1898_s17  ;;  %s2838_s17 = sld [smem:[#allocation2 + $0x53]] }
  0xe2   : > { %1100 = vrot.lane.b32.xlu2 %v1097_v8, %s2115_s20  ;;  %v604_v56 = vrot.slane %v600_v9, 2  ;;  %v1236_v8 = vmul.f32 %v2643_v45, %v1233_v36  ;;  %v1220_v9 = vrot.slane %v1213_v0, 2  ;;  %v1306_v0 = vmul.f32 %v2612_v59, %v1303_v18 }
  0xe3   : > { %v551_v46 = vadd.f32 %v549_v43, %v540_v40  ;;  %v1212_v40 = vmul.f32 %v2698_v12, %v1210_v37  ;;  %v1219_v43 = vrot.slane %v1211_v31, 2  ;;  %v1245_v7 = vrot.slane %v1235_v61, 2 }
  0xe4   : > { %1123 = vrot.lane.b32.xlu1 %v1118_v2, %s2116_s24  ;;  %v2646_v16 = vpop.permute.xlu2 %684  ;;  %v606_v15 = vsel %vm304_vm1, %v604_v56, %v605_v63  ;;  %v1187_v2 = vsel %vm246_vm0, %v1185_v21, %v1186_v24  ;;  %v1243_v47 = vrot.slane %v1236_v8, 2  ;;  %v1304_v31 = vmul.f32 %v2608_v20, %v1303_v18 }
  0xe5   : > { %1121 = vrot.lane.b32.xlu0 %v1117_v3, %s2116_s24  ;;  %v574_v1 = vadd.f32 %v572_v62, %v551_v46  ;;  %v2702_v3 = vld [vmem:[%s2213_s19 + $0x18] sm:$0x3]  ;;  %v1242_v46 = vrot.slane %v1234_v52, 2  ;;  %v1221_v22 = vsel %vm304_vm1, %v1219_v43, %v1220_v9  ;;  %v1305_v9 = vmul.f32 %v2656_v57, %v1303_v18 }
  0xe6   : > { %v594_v51 = vpop.permute.xlu1 %593  ;;  %v1237_v62 = vmul.f32 %v2702_v3, %v1233_v36  ;;  %v1312_v8 = vrot.slane %v1304_v31, 1 }
  0xe7   : > { %v592_v55 = vpop.permute.xlu0 %591  ;;  %v1315_v61 = vrot.slane %v1305_v9, 1 }
  0xe8   : > { %v595_v30 = vsel %vm236_vm3, %v592_v55, %v594_v51  ;;  %v1222_v51 = vrot.slane %v1212_v40, 2  ;;  %v1246_v23 = vrot.slane %v1237_v62, 2 }
  0xe9   : > { %v597_v11 = vadd.f32 %v595_v30, %v574_v1  ;;  %v660_v30 = vstv %s2689_s10  ;;  %s2819_s10 = sld [smem:[#allocation2 + $0x52]] }
  0xea   : > { %1134 = vrot.lane.b32.xlu2 %v1130_v54, %s2115_s20  ;;  %v692_v54 = vstv %s2682_s9  ;;  %v664_v6 = vadd.f32 %v663_v50, %v660_v30  ;;  %v1247_v24 = vsel %vm304_vm1, %v1245_v7, %v1246_v23  ;;  %v1383_v23 = vstv %s2752_s29  ;;  %s2809_s9 = sld [smem:[#allocation2 + $0x2a]] }
  0xeb   : > { %v608_v25 = vadd.f32 %v606_v15, %v597_v11  ;;  %v693_v1 = vmul.f32 %v2608_v20, %v692_v54  ;;  %s2860_s29 = sld [smem:[#allocation2 + $0x4d]] }
  0xec   : > { %1168 = vrot.lane.b32.xlu1 %v1164_v5, %s2116_s24  ;;  %v2677_v17 = vpop.permute.xlu2 %720  ;;  %v694_v5 = vmul.f32 %v2612_v59, %v692_v54 }
  0xed   : > { %1136 = vrot.lane.b32.xlu0 %v1131_v48, %s2115_s20  ;;  %v1244_v48 = vsel %vm304_vm1, %v1242_v46, %v1243_v47  ;;  %v697_v15 = vrot.slane %v693_v1, 1 }
  0xee   : > { %v649_v19 = vpop.permute.xlu1 %648  ;;  %v698_v38 = vrot.slane %v694_v5, 1 }
  0xef   : > { %v628_v26 = vpop.permute.xlu0 %627  ;;  %v652_v35 = vsel %vm236_vm3, %v649_v19, %v2618_v27 }
  0xf0   : > { %v629_v32 = vsel %vm222_vm2, %v2588_v29, %v628_v26  ;;  %v1214_v29 = vmul.f32 %v2702_v3, %v1210_v37  ;;  %v1268_v37 = vmul.f32 %v2628_v39, %v1266_v13 }
  0xf1   : > { %v631_v33 = vadd.f32 %v629_v32, %v608_v25  ;;  %v749_v25 = vstv %s2719_s25  ;;  %v699_v32 = vsel %vm246_vm0, %v697_v15, %v698_v38  ;;  %s1920_s25 = sld [smem:[#allocation2 + $0x55]] }
  0xf2   : > { %1170 = vrot.lane.b32.xlu2 %v1167_v28, %s2116_s24  ;;  %v1223_v53 = vrot.slane %v1214_v29, 2  ;;  %v1267_v28 = vmul.f32 %v2594_v4, %v1266_v13  ;;  %v1326_v29 = vstv %s1899_s28  ;;  %s2852_s28 = sld [smem:[#allocation2 + $0x2d]] }
  0xf3   : > { %v654_v41 = vadd.f32 %v652_v35, %v631_v33  ;;  %v750_v33 = vmul.f32 %v2638_v44, %v749_v25  ;;  %v1313_v35 = vrot.slane %v1306_v0, 1  ;;  %v1328_v54 = vmul.f32 %v2656_v57, %v1326_v29 }
  0xf4   : > { %1193 = vrot.lane.b32.xlu1 %v1190_v34, %s2115_s20  ;;  %v2708_v27 = vpop.permute.xlu2 %775  ;;  %v1224_v63 = vsel %vm304_vm1, %v1222_v51, %v1223_v53  ;;  %v812_v0 = vstv %s2769_s4  ;;  %s2870_s4 = sld [smem:[#allocation5 + $0x5]] }
  0xf5   : > { %v655_v58 = vmax.f32 %v654_v41, 0.0  ;;  %1191 = vrot.lane.b32.xlu0 %v1187_v2, %s2115_s20  ;;  %v1279_v2 = vstv %s2733_s26  ;;  %v754_v43 = vrot.slane %v750_v33, 2  ;;  %v1314_v53 = vsel %vm246_vm0, %v1312_v8, %v1313_v35  ;;  %s1909_s26 = sld [smem:[#allocation2 + $0x4c]] }
  0xf6   : > { %v674_v49 = vpop.permute.xlu1 %673  ;;  %v1280_v41 = vmul.f32 %v2594_v4, %v1279_v2 }
  0xf7   : > { %v656_v55 = vpack.c.bf16 %v655_v58, %v655_v58  ;;  %v672_v56 = vpop.permute.xlu0 %671  ;;  %v1307_v58 = vmul.f32 %v2660_v60, %v1303_v18 }
  0xf8   : > { %v675_v10 = vsel %vm222_vm2, %v672_v56, %v674_v49  ;;  %v1281_v49 = vmul.f32 %v2628_v39, %v1279_v2  ;;  %v1327_v56 = vmul.f32 %v2608_v20, %v1326_v29  ;;  %v813_v2 = vmul.f32 %v2594_v4, %v812_v0 }
  0xf9   : > { %1848 = vst [vmem:[%s2509_s6 + $0x8] sm:$0xf] %v656_v55  ;;  %v677_v19 = vadd.f32 %v675_v10, %v664_v6  ;;  %v1330_v55 = vmul.f32 %v2660_v60, %v1326_v29  ;;  %v1316_v62 = vrot.slane %v1307_v58, 1  ;;  %v1360_v10 = vstv %s2755_s30  ;;  %s2862_s30 = sld [smem:[#allocation2 + $0x30]] }
  0xfa   : > { %1225 = vrot.lane.b32.xlu2 %v1221_v22, %s2116_s24  ;;  %v1329_v22 = vmul.f32 %v2612_v59, %v1326_v29  ;;  %v1335_v6 = vrot.slane %v1327_v56, 1  ;;  %v1361_v38 = vmul.f32 %v2638_v44, %v1360_v10  ;;  %v1363_v18 = vmul.f32 %v2643_v45, %v1360_v10 }
  0xfb   : > { %v1339_v1 = vrot.slane %v1330_v55, 1  ;;  %v1317_v15 = vsel %vm246_vm0, %v1315_v61, %v1316_v62  ;;  %v1364_v31 = vmul.f32 %v2702_v3, %v1360_v10  ;;  %v1385_v58 = vmul.f32 %v2698_v12, %v1383_v23 }
  0xfc   : > { %1248 = vrot.lane.b32.xlu1 %v1244_v48, %s2115_s20  ;;  %v2729_v11 = vpop.permute.xlu2 %800  ;;  %v1336_v7 = vrot.slane %v1329_v22, 1  ;;  %v1370_v33 = vrot.slane %v1363_v18, 2  ;;  %v1416_v61 = vstv %s2801_s8  ;;  %s2902_s8 = sld [smem:[#allocation2 + $0x33]] }
  0xfd   : > { %1227 = vrot.lane.b32.xlu0 %v1224_v63, %s2116_s24  ;;  %v1338_v63 = vrot.slane %v1328_v54, 1  ;;  %v1373_v29 = vrot.slane %v1364_v31, 2  ;;  %v1395_v55 = vrot.slane %v1385_v58, 2 }
  0xfe   : > { %v719_v14 = vpop.permute.xlu1 %718 }
  0xff   : > { %v687_v21 = vpop.permute.xlu0 %686  ;;  %v722_v46 = vsel %vm222_vm2, %v719_v14, %v2677_v17 }
 0x100   : > { %v688_v36 = vsel %vm236_vm3, %v2646_v16, %v687_v21  ;;  %v751_v16 = vmul.f32 %v2643_v45, %v749_v25 }
 0x101   : > { %v690_v26 = vadd.f32 %v688_v36, %v677_v19  ;;  %v1384_v36 = vmul.f32 %v2638_v44, %v1383_v23 }
 0x102   : > { %1250 = vrot.lane.b32.xlu2 %v1247_v24, %s2115_s20  ;;  %v755_v50 = vrot.slane %v751_v16, 2  ;;  %v1340_v24 = vsel %vm246_vm0, %v1338_v63, %v1339_v1 }
 0x103   : > { %v701_v52 = vadd.f32 %v699_v32, %v690_v26  ;;  %v1337_v26 = vsel %vm246_vm0, %v1335_v6, %v1336_v7  ;;  %v1369_v32 = vrot.slane %v1361_v38, 2 }
 0x104   : > { %1273 = vrot.lane.b32.xlu1 %v1268_v37, %s2116_s24  ;;  %v2748_v34 = vpop.permute.xlu2 %834  ;;  %v756_v30 = vsel %vm304_vm1, %v754_v43, %v755_v50  ;;  %v1386_v37 = vmul.f32 %v2643_v45, %v1383_v23 }
 0x105   : > { %1271 = vrot.lane.b32.xlu0 %v1267_v28, %s2116_s24  ;;  %v724_v51 = vadd.f32 %v722_v46, %v701_v52  ;;  %v1362_v28 = vmul.f32 %v2698_v12, %v1360_v10  ;;  %v1371_v9 = vsel %vm304_vm1, %v1369_v32, %v1370_v33  ;;  %v1387_v46 = vmul.f32 %v2702_v3, %v1383_v23 }
 0x106   : > { %v744_v40 = vpop.permute.xlu1 %743  ;;  %v1393_v8 = vrot.slane %v1386_v37, 2  ;;  %v1418_v23 = vmul.f32 %v2628_v39, %v1416_v61  ;;  %v899_v10 = vstv %s2809_s9  ;;  %s2915_s9 = sld [smem:[#allocation2 + $0x58]] }
 0x107   : > { %v742_v42 = vpop.permute.xlu0 %741  ;;  %v1396_v56 = vrot.slane %v1387_v46, 2  ;;  %v900_v38 = vmul.f32 %v2638_v44, %v899_v10  ;;  %v901_v18 = vmul.f32 %v2643_v45, %v899_v10 }
 0x108   : > { %v745_v47 = vsel %vm236_vm3, %v742_v42, %v744_v40  ;;  %v1372_v40 = vrot.slane %v1362_v28, 2 }
 0x109   : > { %v747_v17 = vadd.f32 %v745_v47, %v724_v51  ;;  %v810_v47 = vstv %s2785_s7  ;;  %v1397_v6 = vsel %vm304_vm1, %v1395_v55, %v1396_v56  ;;  %v905_v0 = vrot.slane %v901_v18, 2  ;;  %s2890_s7 = sld [smem:[#allocation2 + $0x56]] }
 0x10a   : > { %1284 = vrot.lane.b32.xlu2 %v1280_v41, %s2115_s20  ;;  %v842_v41 = vstv %s2778_s5  ;;  %v1374_v50 = vsel %vm304_vm1, %v1372_v40, %v1373_v29  ;;  %v814_v54 = vadd.f32 %v813_v2, %v810_v47  ;;  %v1603_v2 = vstv %s1920_s25  ;;  %s2886_s5 = sld [smem:[#allocation2 + $0x4f]] }
 0x10b   : > { %v758_v13 = vadd.f32 %v756_v30, %v747_v17  ;;  %v843_v51 = vmul.f32 %v2608_v20, %v842_v41  ;;  %v1453_v40 = vstv %s1909_s26  ;;  %v960_v18 = vstv %s2870_s4  ;;  %s2964_s25 = sld [smem:[#allocation2 + $0x39]] }
 0x10c   : > { %1318 = vrot.lane.b32.xlu1 %v1314_v53, %s2116_s24  ;;  %v2773_v48 = vpop.permute.xlu2 %870  ;;  %v844_v53 = vmul.f32 %v2612_v59, %v842_v41  ;;  %v1457_v55 = vmul.f32 %v2660_v60, %v1453_v40  ;;  %s2971_s26 = sld [smem:[#allocation5 + $0x6]] }
 0x10d   : > { %1286 = vrot.lane.b32.xlu0 %v1281_v49, %s2115_s20  ;;  %v847_v30 = vrot.slane %v843_v51, 1  ;;  %v1606_v51 = vmul.f32 %v2612_v59, %v1603_v2  ;;  %s1916_s4 = sld [smem:[#allocation2 + $0x51]] }
 0x10e   : > { %v799_v5 = vpop.permute.xlu1 %798  ;;  %v848_v63 = vrot.slane %v844_v53, 1 }
 0x10f   : > { %v778_v14 = vpop.permute.xlu0 %777  ;;  %v802_v25 = vsel %vm236_vm3, %v799_v5, %v2729_v11  ;;  %v1392_v11 = vrot.slane %v1384_v36, 2 }
 0x110   : > { %v779_v19 = vsel %vm222_vm2, %v2708_v27, %v778_v14  ;;  %v1417_v14 = vmul.f32 %v2594_v4, %v1416_v61 }
 0x111   : > { %v781_v21 = vadd.f32 %v779_v19, %v758_v13  ;;  %v1394_v49 = vsel %vm304_vm1, %v1392_v11, %v1393_v8 }
 0x112   : > { %1320 = vrot.lane.b32.xlu2 %v1317_v15, %s2116_s24  ;;  %v849_v15 = vsel %vm246_vm0, %v847_v30, %v848_v63  ;;  %v1613_v30 = vrot.slane %v1606_v51, 1  ;;  %v1476_v63 = vstv %s2860_s29  ;;  %s1893_s29 = sld [smem:[#allocation5 + $0x7]] }
 0x113   : > { %v804_v27 = vadd.f32 %v802_v25, %v781_v21  ;;  %v1566_v21 = vstv %s2819_s10  ;;  %s2937_s10 = sld [smem:[#allocation2 + $0x59]] }
 0x114   : > { %1343 = vrot.lane.b32.xlu1 %v1340_v24, %s2115_s20  ;;  %v2798_v16 = vpop.permute.xlu2 %925  ;;  %v1429_v24 = vstv %s2825_s11  ;;  %v1568_v29 = vmul.f32 %v2628_v39, %v1566_v21  ;;  %s2940_s11 = sld [smem:[#allocation2 + $0x50]] }
 0x115   : > { %v805_v52 = vmax.f32 %v804_v27, 0.0  ;;  %1341 = vrot.lane.b32.xlu0 %v1337_v26, %s2115_s20  ;;  %v1430_v37 = vmul.f32 %v2594_v4, %v1429_v24  ;;  %v904_v26 = vrot.slane %v900_v38, 2  ;;  %v1567_v27 = vmul.f32 %v2594_v4, %v1566_v21 }
 0x116   : > { %v824_v35 = vpop.permute.xlu1 %823  ;;  %v1431_v33 = vmul.f32 %v2628_v39, %v1429_v24  ;;  %v1607_v38 = vmul.f32 %v2660_v60, %v1603_v2  ;;  %v1480_v21 = vmul.f32 %v2660_v60, %v1476_v63 }
 0x117   : > { %v806_v42 = vpack.c.bf16 %v805_v52, %v805_v52  ;;  %v822_v43 = vpop.permute.xlu0 %821  ;;  %v906_v11 = vsel %vm304_vm1, %v904_v26, %v905_v0  ;;  %v1477_v26 = vmul.f32 %v2608_v20, %v1476_v63 }
 0x118   : > { %v825_v22 = vsel %vm222_vm2, %v822_v43, %v824_v35  ;;  %v1454_v43 = vmul.f32 %v2608_v20, %v1453_v40  ;;  %v1616_v0 = vrot.slane %v1607_v38, 1 }
 0x119   : > { %1859 = vst [vmem:[%s2509_s6 + $0xc] sm:$0xf] %v806_v42  ;;  %v827_v1 = vadd.f32 %v825_v22, %v814_v54  ;;  %v1455_v54 = vmul.f32 %v2656_v57, %v1453_v40 }
 0x11a   : > { %1375 = vrot.lane.b32.xlu2 %v1371_v9, %s2116_s24  ;;  %v1456_v9 = vmul.f32 %v2612_v59, %v1453_v40  ;;  %v1462_v56 = vrot.slane %v1454_v43, 1  ;;  %v1485_v40 = vrot.slane %v1477_v26, 1 }
 0x11c   : > { %1398 = vrot.lane.b32.xlu1 %v1394_v49, %s2115_s20  ;;  %v2821_v17 = vpop.permute.xlu2 %950  ;;  %v1463_v22 = vrot.slane %v1456_v9, 1 }
 0x11d   : > { %1377 = vrot.lane.b32.xlu0 %v1374_v50, %s2116_s24  ;;  %v1604_v50 = vmul.f32 %v2608_v20, %v1603_v2 }
 0x11e   : > { %v869_v62 = vpop.permute.xlu1 %868 }
 0x11f   : > { %v837_v5 = vpop.permute.xlu0 %836  ;;  %v872_v28 = vsel %vm222_vm2, %v869_v62, %v2773_v48  ;;  %v1579_v48 = vstv %s2838_s17  ;;  %s2955_s17 = sld [smem:[#allocation2 + $0x36]] }
 0x120   : > { %v838_v7 = vsel %vm236_vm3, %v2748_v34, %v837_v5  ;;  %v1581_v46 = vmul.f32 %v2628_v39, %v1579_v48  ;;  %v1580_v49 = vmul.f32 %v2594_v4, %v1579_v48 }
 0x121   : > { %v840_v13 = vadd.f32 %v838_v7, %v827_v1  ;;  %v1466_v7 = vrot.slane %v1457_v55, 1  ;;  %v1049_v55 = vstv %s2902_s8  ;;  %s1919_s8 = sld [smem:[#allocation2 + $0x54]] }
 0x122   : > { %1400 = vrot.lane.b32.xlu2 %v1397_v6, %s2115_s20  ;;  %v1465_v6 = vrot.slane %v1455_v54, 1 }
 0x123   : > { %v851_v34 = vadd.f32 %v849_v15, %v840_v13  ;;  %v1605_v15 = vmul.f32 %v2656_v57, %v1603_v2 }
 0x124   : > { %1423 = vrot.lane.b32.xlu1 %v1418_v23, %s2116_s24  ;;  %v2840_v19 = vpop.permute.xlu2 %984  ;;  %v992_v23 = vstv %s2862_s30  ;;  %s1900_s30 = sld [smem:[#allocation2 + $0x45]] }
 0x125   : > { %1421 = vrot.lane.b32.xlu0 %v1417_v14, %s2116_s24  ;;  %v874_v32 = vadd.f32 %v872_v28, %v851_v34  ;;  %v1464_v14 = vsel %vm246_vm0, %v1462_v56, %v1463_v22  ;;  %v1478_v34 = vmul.f32 %v2656_v57, %v1476_v63  ;;  %v1479_v28 = vmul.f32 %v2612_v59, %v1476_v63 }
 0x126   : > { %v894_v36 = vpop.permute.xlu1 %893 }
 0x127   : > { %v892_v25 = vpop.permute.xlu0 %891 }
 0x128   : > { %v895_v31 = vsel %vm236_vm3, %v892_v25, %v894_v36  ;;  %v993_v36 = vmul.f32 %v2608_v20, %v992_v23  ;;  %v1467_v25 = vsel %vm246_vm0, %v1465_v6, %v1466_v7 }
 0x129   : > { %v897_v52 = vadd.f32 %v895_v31, %v874_v32 }
 0x12a   : > { %1434 = vrot.lane.b32.xlu2 %v1430_v37, %s2115_s20  ;;  %v994_v37 = vmul.f32 %v2612_v59, %v992_v23  ;;  %v997_v48 = vrot.slane %v993_v36, 1  ;;  %v1660_v23 = vstv %s2915_s9  ;;  %s1915_s9 = sld [smem:[#allocation5 + $0x9]] }
 0x12b   : > { %v908_v41 = vadd.f32 %v906_v11, %v897_v52  ;;  %v1489_v52 = vrot.slane %v1480_v21, 1 }
 0x12c   : > { %1571 = vrot.lane.b32.xlu1 %v1567_v27, %s2116_s24  ;;  %v2856_v8 = vpop.permute.xlu2 %1020  ;;  %v1615_v27 = vrot.slane %v1605_v15, 1 }
 0x12d   : > { %1436 = vrot.lane.b32.xlu0 %v1431_v33, %s2115_s20  ;;  %v1488_v33 = vrot.slane %v1478_v34, 1 }
 0x12e   : > { %v949_v35 = vpop.permute.xlu1 %948 }
 0x12f   : > { %v928_v42 = vpop.permute.xlu0 %927  ;;  %v952_v53 = vsel %vm236_vm3, %v949_v35, %v2821_v17  ;;  %v1612_v17 = vrot.slane %v1604_v50, 1  ;;  %v998_v35 = vrot.slane %v994_v37, 1  ;;  %v1490_v50 = vsel %vm246_vm0, %v1488_v33, %v1489_v52 }
 0x130   : > { %v929_v58 = vsel %vm222_vm2, %v2798_v16, %v928_v42  ;;  %v962_v16 = vstv %s2852_s28  ;;  %v1626_v42 = vstv %s2890_s7  ;;  %v1662_v37 = vmul.f32 %v2698_v12, %v1660_v23  ;;  %s1897_s28 = sld [smem:[#allocation2 + $0x42]] }
 0x131   : > { %v931_v47 = vadd.f32 %v929_v58, %v908_v41  ;;  %v963_v5 = vmul.f32 %v2594_v4, %v962_v16  ;;  %v1614_v24 = vsel %vm246_vm0, %v1612_v17, %v1613_v30  ;;  %v1510_v41 = vstv %s2886_s5  ;;  %s1905_s5 = sld [smem:[#allocation2 + $0x48]] }
 0x132   : > { %1573 = vrot.lane.b32.xlu2 %v1568_v29, %s2116_s24  ;;  %v1486_v29 = vrot.slane %v1479_v28, 1  ;;  %v1617_v58 = vsel %vm246_vm0, %v1615_v27, %v1616_v0  ;;  %v1513_v54 = vmul.f32 %v2643_v45, %v1510_v41  ;;  %v1628_v56 = vmul.f32 %v2656_v57, %v1626_v42  ;;  %s1908_s7 = sld [smem:[#allocation2 + $0x4b]] }
 0x133   : > { %v954_v39 = vadd.f32 %v952_v53, %v931_v47  ;;  %v964_v31 = vadd.f32 %v963_v5, %v960_v18  ;;  %v1629_v47 = vmul.f32 %v2612_v59, %v1626_v42  ;;  %v1511_v53 = vmul.f32 %v2638_v44, %v1510_v41 }
 0x134   : > { %1586 = vrot.lane.b32.xlu1 %v1581_v46, %s2115_s20  ;;  %v2882_v61 = vpop.permute.xlu2 %1075  ;;  %v1627_v46 = vmul.f32 %v2608_v20, %v1626_v42  ;;  %v1487_v16 = vsel %vm246_vm0, %v1485_v40, %v1486_v29  ;;  %v1630_v22 = vmul.f32 %v2660_v60, %v1626_v42  ;;  %v1050_v17 = vmul.f32 %v2638_v44, %v1049_v55 }
 0x135   : > { %v955_v62 = vmax.f32 %v954_v39, 0.0  ;;  %1584 = vrot.lane.b32.xlu0 %v1580_v49, %s2115_s20  ;;  %v999_v39 = vsel %vm246_vm0, %v997_v48, %v998_v35  ;;  %v1051_v30 = vmul.f32 %v2643_v45, %v1049_v55  ;;  %v1519_v5 = vrot.slane %v1511_v53, 2 }
 0x136   : > { %v974_v1 = vpop.permute.xlu1 %973  ;;  %v1520_v57 = vrot.slane %v1513_v54, 2  ;;  %v1638_v6 = vrot.slane %v1628_v56, 1  ;;  %v1639_v7 = vrot.slane %v1630_v22, 1  ;;  %v1514_v15 = vmul.f32 %v2702_v3, %v1510_v41 }
 0x137   : > { %v956_v10 = vpack.c.bf16 %v955_v62, %v955_v62  ;;  %v972_v13 = vpop.permute.xlu0 %971  ;;  %v1636_v62 = vrot.slane %v1629_v47, 1  ;;  %v1054_v34 = vrot.slane %v1050_v17, 2  ;;  %v1055_v21 = vrot.slane %v1051_v30, 2 }
 0x138   : > { %v975_v32 = vsel %vm222_vm2, %v972_v13, %v974_v1  ;;  %v1521_v36 = vsel %vm304_vm1, %v1519_v5, %v1520_v57  ;;  %v1640_v26 = vsel %vm246_vm0, %v1638_v6, %v1639_v7  ;;  %v1661_v28 = vmul.f32 %v2638_v44, %v1660_v23 }
 0x139   : > { %1870 = vst [vmem:[%s2509_s6 + $0x10] sm:$0xf] %v956_v10  ;;  %v977_v43 = vadd.f32 %v975_v32, %v964_v31  ;;  %v1663_v31 = vmul.f32 %v2643_v45, %v1660_v23  ;;  %v1523_v0 = vrot.slane %v1514_v15, 2  ;;  %v1056_v32 = vsel %vm304_vm1, %v1054_v34, %v1055_v21 }
 0x13a   : > { %1468 = vrot.lane.b32.xlu2 %v1464_v14, %s2116_s24  ;;  %v1512_v14 = vmul.f32 %v2698_v12, %v1510_v41  ;;  %v1672_v52 = vrot.slane %v1662_v37, 2  ;;  %v1683_v29 = vstv %s2937_s10  ;;  %v1533_v41 = vstv %s2940_s11  ;;  %s1904_s10 = sld [smem:[#allocation5 + $0x8]] }
 0x13b   : > { %v1670_v40 = vrot.slane %v1663_v31, 2  ;;  %v1686_v53 = vmul.f32 %v2643_v45, %v1683_v29  ;;  %v1112_v56 = vstv %s2955_s17  ;;  %v1142_v6 = vstv %s2964_s25  ;;  %s3040_s11 = sld [smem:[#allocation2 + $0x57]] }
 0x13c   : > { %1618 = vrot.lane.b32.xlu1 %v1614_v24, %s2116_s24  ;;  %v2910_v11 = vpop.permute.xlu2 %1100  ;;  %v1522_v27 = vrot.slane %v1512_v14, 2  ;;  %v1113_v5 = vmul.f32 %v2594_v4, %v1112_v56  ;;  %v1687_v14 = vmul.f32 %v2702_v3, %v1683_v29  ;;  %v1110_v15 = vstv %s2971_s26  ;;  %s3043_s17 = sld [smem:[#allocation2 + $0x4e]] }
 0x13d   : > { %1470 = vrot.lane.b32.xlu0 %v1467_v25, %s2116_s24  ;;  %v1664_v25 = vmul.f32 %v2702_v3, %v1660_v23  ;;  %v1693_v30 = vrot.slane %v1686_v53, 2  ;;  %v1143_v4 = vmul.f32 %v2608_v20, %v1142_v6  ;;  %v1144_v34 = vmul.f32 %v2612_v59, %v1142_v6 }
 0x13e   : > { %v1019_v2 = vpop.permute.xlu1 %1018  ;;  %v1114_v21 = vadd.f32 %v1113_v5, %v1110_v15  ;;  %v3023_v5 = vld [vmem:[%s2213_s19 + $0x10] sm:$0x1] }
 0x13f   : > { %v987_v9 = vpop.permute.xlu0 %986  ;;  %v1022_v38 = vsel %vm222_vm2, %v1019_v2, %v2856_v8  ;;  %v1673_v48 = vrot.slane %v1664_v25, 2  ;;  %v1669_v2 = vrot.slane %v1661_v28, 2  ;;  %v1147_v25 = vrot.slane %v1143_v4, 1 }
 0x140   : > { %v988_v49 = vsel %vm236_vm3, %v2840_v19, %v987_v9  ;;  %v1635_v19 = vrot.slane %v1627_v46, 1  ;;  %v1524_v9 = vsel %vm304_vm1, %v1522_v27, %v1523_v0  ;;  %v1536_v46 = vmul.f32 %v2643_v45, %v1533_v41 }
 0x141   : > { %v990_v51 = vadd.f32 %v988_v49, %v977_v43  ;;  %v1671_v55 = vsel %vm304_vm1, %v1669_v2, %v1670_v40  ;;  %v1349_v4 = vstv %s1900_s30 }
 0x142   : > { %1620 = vrot.lane.b32.xlu2 %v1617_v58, %s2116_s24  ;;  %v1637_v13 = vsel %vm246_vm0, %v1635_v19, %v1636_v62  ;;  %v1534_v58 = vmul.f32 %v2638_v44, %v1533_v41  ;;  %v1543_v19 = vrot.slane %v1536_v46, 2 }
 0x143   : > { %v1001_v1 = vadd.f32 %v999_v39, %v990_v51  ;;  %v1684_v51 = vmul.f32 %v2638_v44, %v1683_v29  ;;  %v1535_v39 = vmul.f32 %v2698_v12, %v1533_v41 }
 0x144   : > { %1493 = vrot.lane.b32.xlu1 %v1490_v50, %s2115_s20  ;;  %v2934_v63 = vpop.permute.xlu2 %1134  ;;  %v1674_v50 = vsel %vm304_vm1, %v1672_v52, %v1673_v48  ;;  %v1542_v22 = vrot.slane %v1534_v58, 2 }
 0x145   : > { %1491 = vrot.lane.b32.xlu0 %v1487_v16, %s2115_s20  ;;  %v1024_v24 = vadd.f32 %v1022_v38, %v1001_v1  ;;  %v1537_v16 = vmul.f32 %v2702_v3, %v1533_v41  ;;  %v1545_v57 = vrot.slane %v1535_v39, 2 }
 0x146   : > { %v1044_v60 = vpop.permute.xlu1 %1043 }
 0x147   : > { %v1042_v10 = vpop.permute.xlu0 %1041 }
 0x148   : > { %v1045_v18 = vsel %vm236_vm3, %v1042_v10, %v1044_v60  ;;  %v1546_v60 = vrot.slane %v1537_v16, 2  ;;  %v1544_v10 = vsel %vm304_vm1, %v1542_v22, %v1543_v19  ;;  %v3014_v22 = vld [vmem:[%s2213_s19] sm:$0xff] }
 0x149   : > { %v1047_v8 = vadd.f32 %v1045_v18, %v1024_v24 }
 0x14a   : > { %1641 = vrot.lane.b32.xlu2 %v1637_v13, %s2115_s20  ;;  %v1685_v13 = vmul.f32 %v2698_v12, %v1683_v29  ;;  %v1547_v18 = vsel %vm304_vm1, %v1545_v57, %v1546_v60 }
 0x14b   : > { %v1058_v42 = vadd.f32 %v1056_v32, %v1047_v8 }
 0x14c   : > { %1525 = vrot.lane.b32.xlu1 %v1521_v36, %s2116_s24  ;;  %v2959_v33 = vpop.permute.xlu2 %1170  ;;  %v1695_v24 = vrot.slane %v1685_v13, 2  ;;  %v1696_v36 = vrot.slane %v1687_v14, 2 }
 0x14d   : > { %1643 = vrot.lane.b32.xlu0 %v1640_v26, %s2115_s20  ;;  %v1148_v26 = vrot.slane %v1144_v34, 1 }
 0x14e   : > { %v1099_v35 = vpop.permute.xlu1 %1098  ;;  %v1697_v20 = vsel %vm304_vm1, %v1695_v24, %v1696_v36  ;;  %v1351_v24 = vmul.f32 %v2643_v45, %v1349_v4 }
 0x14f   : > { %v1078_v43 = vpop.permute.xlu0 %1077  ;;  %v1102_v54 = vsel %vm236_vm3, %v1099_v35, %v2910_v11  ;;  %v1692_v11 = vrot.slane %v1684_v51, 2  ;;  %v1149_v0 = vsel %vm246_vm0, %v1147_v25, %v1148_v26 }
 0x150   : > { %v1079_v47 = vsel %vm222_vm2, %v2882_v61, %v1078_v43 }
 0x151   : > { %v1081_v49 = vadd.f32 %v1079_v47, %v1058_v42  ;;  %v1694_v38 = vsel %vm304_vm1, %v1692_v11, %v1693_v30  ;;  %v1292_v11 = vstv %s1897_s28  ;;  %v1260_v30 = vstv %s1893_s29  ;;  %s1710_s28 = scalar_lea.sflag [#allocation3], %s188_s27 }
 0x152   : > { %1527 = vrot.lane.b32.xlu2 %v1524_v9, %s2116_s24  ;;  %v1294_v57 = vmul.f32 %v3023_v5, %v1292_v11 }
 0x153   : > { %v1104_v61 = vadd.f32 %v1102_v54, %v1081_v49 }
 0x154   : > { %1677 = vrot.lane.b32.xlu1 %v1674_v50, %s2116_s24  ;;  %v1226_v62 = vpop.permute.xlu2 %1225  ;;  %v1298_v13 = vrot.slane %v1294_v57, 1 }
 0x155   : > { %v1105_v17 = vmax.f32 %v1104_v61, 0.0  ;;  %1675 = vrot.lane.b32.xlu0 %v1671_v55, %s2116_s24  ;;  %s1889_s24 = sld [smem:[#allocation2 + $0x3c]] }
 0x156   : > { %v1124_v1 = vpop.permute.xlu1 %1123 }
 0x157   : > { %v1106_v7 = vpack.c.bf16 %v1105_v17, %v1105_v17  ;;  %v1122_v23 = vpop.permute.xlu0 %1121 }
 0x158   : > { %v1125_v12 = vsel %vm222_vm2, %v1122_v23, %v1124_v1 }
 0x159   : > { %1881 = vst [vmem:[%s2509_s6 + $0x14] sm:$0xf] %v1106_v7  ;;  %v1127_v28 = vadd.f32 %v1125_v12, %v1114_v21  ;;  %v1350_v21 = vmul.f32 %v2638_v44, %v1349_v4  ;;  %v1649_v4 = vstv %s3040_s11 }
 0x15a   : > { %1548 = vrot.lane.b32.xlu2 %v1544_v10, %s2115_s20 }
 0x15b   : > { %v1199_v27 = vstv %s1889_s24 }
 0x15c   : > { %1698 = vrot.lane.b32.xlu1 %v1694_v38, %s2115_s20  ;;  %v1251_v3 = vpop.permute.xlu2 %1250  ;;  %v1200_v32 = vmul.f32 %v2638_v44, %v1199_v27  ;;  %v1201_v52 = vmul.f32 %v2643_v45, %v1199_v27 }
 0x15d   : > { %1550 = vrot.lane.b32.xlu0 %v1547_v18, %s2115_s20 }
 0x15e   : > { %v1169_v37 = vpop.permute.xlu1 %1168  ;;  %v1205_v42 = vrot.slane %v1201_v52, 2 }
 0x15f   : > { %v1137_v31 = vpop.permute.xlu0 %1136  ;;  %v1172_v29 = vsel %vm222_vm2, %v1169_v37, %v2959_v33 }
 0x160   : > { %v1138_v59 = vsel %vm236_vm3, %v2934_v63, %v1137_v31  ;;  %v1204_v63 = vrot.slane %v1200_v32, 2  ;;  %v1355_v31 = vrot.slane %v1351_v24, 2 }
 0x161   : > { %v1140_v8 = vadd.f32 %v1138_v59, %v1127_v28  ;;  %v1354_v28 = vrot.slane %v1350_v21, 2 }
 0x162   : > { %1700 = vrot.lane.b32.xlu2 %v1697_v20, %s2115_s20  ;;  %v1206_v58 = vsel %vm304_vm1, %v1204_v63, %v1205_v42  ;;  %s1894_s20 = sld [smem:[#allocation2 + $0x3f]] }
 0x163   : > { %v1151_v35 = vadd.f32 %v1149_v0, %v1140_v8  ;;  %v1356_v8 = vsel %vm304_vm1, %v1354_v28, %v1355_v31 }
 0x164   : > { %v1285_v48 = vpop.permute.xlu2 %1284 }
 0x165   : > { %v1174_v43 = vadd.f32 %v1172_v29, %v1151_v35 }
 0x166   : > { %v1194_v2 = vpop.permute.xlu1 %1193 }
 0x167   : > { %v1192_v40 = vpop.permute.xlu0 %1191 }
 0x168   : > { %v1195_v41 = vsel %vm236_vm3, %v1192_v40, %v1194_v2  ;;  %v1262_v55 = vstv %s1894_s20 }
 0x169   : > { %v1197_v9 = vadd.f32 %v1195_v41, %v1174_v43  ;;  %v1263_v19 = vmul.f32 %v3014_v22, %v1262_v55  ;;  %v1442_v55 = vstv %s1908_s7  ;;  %s2061_s7 = scalar_lea.hbm %s3109_s3, 80 }
 0x16b   : > { %v1208_v49 = vadd.f32 %v1206_v58, %v1197_v9  ;;  %v1264_v60 = vadd.f32 %v1263_v19, %v1260_v30  ;;  %v1410_v19 = vstv %s1904_s10 }
 0x16c   : > { %v1321_v46 = vpop.permute.xlu2 %1320 }
 0x16e   : > { %v1249_v47 = vpop.permute.xlu1 %1248 }
 0x16f   : > { %v1228_v50 = vpop.permute.xlu0 %1227  ;;  %v1252_v53 = vsel %vm236_vm3, %v1249_v47, %v1251_v3 }
 0x170   : > { %v1229_v51 = vsel %vm222_vm2, %v1226_v62, %v1228_v50  ;;  %v3019_v62 = vld [vmem:[%s2213_s19] sm:$0xfe] }
 0x171   : > { %v1231_v33 = vadd.f32 %v1229_v51, %v1208_v49  ;;  %v1293_v1 = vmul.f32 %v3019_v62, %v1292_v11  ;;  %v1562_v51 = vstv %s1916_s4 }
 0x173   : > { %v1254_v54 = vadd.f32 %v1252_v53, %v1231_v33  ;;  %v1297_v10 = vrot.slane %v1293_v1, 1  ;;  %v1412_v33 = vstv %s1905_s5  ;;  %v1563_v53 = vmul.f32 %v3014_v22, %v1562_v51 }
 0x174   : > { %v1376_v39 = vpop.permute.xlu2 %1375  ;;  %v1443_v1 = vmul.f32 %v3019_v62, %v1442_v55 }
 0x175   : > { %v1255_v16 = vmax.f32 %v1254_v54, 0.0  ;;  %v1299_v34 = vsel %vm246_vm0, %v1297_v10, %v1298_v13  ;;  %v1592_v54 = vstv %s1919_s8 }
 0x176   : > { %v1274_v61 = vpop.permute.xlu1 %1273  ;;  %v1593_v11 = vmul.f32 %v3019_v62, %v1592_v54  ;;  %v1594_v30 = vmul.f32 %v3023_v5, %v1592_v54 }
 0x177   : > { %v1256_v56 = vpack.c.bf16 %v1255_v16, %v1255_v16  ;;  %v1272_v17 = vpop.permute.xlu0 %1271  ;;  %v1413_v16 = vmul.f32 %v3014_v22, %v1412_v33 }
 0x178   : > { %v1275_v6 = vsel %vm222_vm2, %v1272_v17, %v1274_v61  ;;  %v1560_v61 = vstv %s1915_s9  ;;  %v1597_v10 = vrot.slane %v1593_v11, 1  ;;  %v1598_v13 = vrot.slane %v1594_v30, 1 }
 0x179   : > { %1892 = vst [vmem:[%s2509_s6 + $0x18] sm:$0xf] %v1256_v56  ;;  %v1277_v14 = vadd.f32 %v1275_v6, %v1264_v60  ;;  %v1564_v57 = vadd.f32 %v1563_v53, %v1560_v61  ;;  %v1444_v60 = vmul.f32 %v3023_v5, %v1442_v55  ;;  %v1414_v6 = vadd.f32 %v1413_v16, %v1410_v19 }
 0x17c   : > { %v1401_v7 = vpop.permute.xlu2 %1400 }
 0x17e   : > { %v1319_v23 = vpop.permute.xlu1 %1318 }
 0x17f   : > { %v1287_v15 = vpop.permute.xlu0 %1286  ;;  %v1322_v25 = vsel %vm222_vm2, %v1319_v23, %v1321_v46 }
 0x180   : > { %v1288_v38 = vsel %vm236_vm3, %v1285_v48, %v1287_v15 }
 0x181   : > { %v1290_v18 = vadd.f32 %v1288_v38, %v1277_v14  ;;  %v1447_v14 = vrot.slane %v1443_v1, 1  ;;  %v1448_v38 = vrot.slane %v1444_v60, 1 }
 0x183   : > { %v1301_v36 = vadd.f32 %v1299_v34, %v1290_v18  ;;  %v1499_v34 = vstv %s3043_s17  ;;  %v1449_v31 = vsel %vm246_vm0, %v1447_v14, %v1448_v38 }
 0x184   : > { %v3031_v3 = vpop.permute.xlu2 %1434 }
 0x185   : > { %v1324_v20 = vadd.f32 %v1322_v25, %v1301_v36 }
 0x186   : > { %v1344_v12 = vpop.permute.xlu1 %1343 }
 0x187   : > { %v1342_v37 = vpop.permute.xlu0 %1341 }
 0x188   : > { %v1345_v26 = vsel %vm236_vm3, %v1342_v37, %v1344_v12  ;;  %v1599_v12 = vsel %vm246_vm0, %v1597_v10, %v1598_v13  ;;  %v2009_v37 = vld [vmem:[%s2213_s19] sm:$0xfc] }
 0x189   : > { %v1347_v59 = vadd.f32 %v1345_v26, %v1324_v20  ;;  %v1650_v25 = vmul.f32 %v2009_v37, %v1649_v4  ;;  %v2010_v26 = vld [vmem:[%s2213_s19 + $0x10] sm:$0x3]  ;;  %v1500_v20 = vmul.f32 %v2009_v37, %v1499_v34  ;;  %s1931_s19 = smul.u32 40, %s2160_s16  ;;  %s1722_s16 = sshll.u32 %s2509_s6, 4  ;;  %s1723_s16 = int_to_ptr.vmem [resolvable:$true] %s1722_s16 }
 0x18a   : > { %v1651_v28 = vmul.f32 %v2010_v26, %v1649_v4 }
 0x18b   : > { %v1358_v44 = vadd.f32 %v1356_v8, %v1347_v59  ;;  %v1501_v59 = vmul.f32 %v2010_v26, %v1499_v34  ;;  %s1721_s24 = scalar_lea.hbm %s3109_s3, %s1931_s19 }
 0x18c   : > { %v1574_v32 = vpop.permute.xlu2 %1573  ;;  %s1724_s20 = sshll.u32 %s1721_s24, 4  ;;  %s1725_s20 = int_to_ptr.hbm [resolvable:$true] %s1724_s20 }
 0x18d   : > { %s2055_s29 = sshra.s32 %s1725_s20, 4  ;;  %s2056_s29 = int_to_ptr.hbm [resolvable:$true] %s2055_s29 }
 0x18e   : > { %v1399_v27 = vpop.permute.xlu1 %1398  ;;  %s2057_s30 = scalar_lea.hbm %s2056_s29, 40  ;;  %p2062_p3 = scmp.lt.s32.totalorder %s2056_s29, %s3109_s3 }
 0x18f   : > { %v1378_v0 = vpop.permute.xlu0 %1377  ;;  %v1402_v48 = vsel %vm236_vm3, %v1399_v27, %v1401_v7  ;;  %p2058_p0 = scmp.ne.s32.totalorder %s2056_s29, %s2057_s30  ;;  %p2063_p4 = scmp.lt.s32.totalorder %s2061_s7, %s2057_s30 }
 0x190   : > { %v1379_v45 = vsel %vm222_vm2, %v1376_v39, %v1378_v0 }
 0x191   : > { %v1381_v52 = vadd.f32 %v1379_v45, %v1358_v44  ;;  %p2059_p1 = pnand %p2058_p0, %p2177_p5  ;;  %p2064_p7 = por %p2063_p4, %p2062_p3 }
 0x193   : > { %v1404_v35 = vadd.f32 %v1402_v48, %v1381_v52  ;;  %v1655_v52 = vrot.slane %v1651_v28, 2  ;;  %p2060_p2 = pneg %p2059_p1 }
 0x194   : > { %v1469_v63 = vpop.permute.xlu2 %1468 }
 0x195   : > { %v1405_v2 = vmax.f32 %v1404_v35, 0.0  ;;  %p2065_p8 = pnand %p2064_p7, %p2060_p2 }
 0x196   : > { %v1424_v40 = vpop.permute.xlu1 %1423 }
 0x197   : > { %v1406_v29 = vpack.c.bf16 %v1405_v2, %v1405_v2  ;;  %v1422_v41 = vpop.permute.xlu0 %1421  ;;  %v1504_v2 = vrot.slane %v1500_v20, 2 }
 0x198   : > { %v1425_v7 = vsel %vm222_vm2, %v1422_v41, %v1424_v40  ;;  %v1505_v40 = vrot.slane %v1501_v59, 2 }
 0x199   : > { %1903 = vst [vmem:[%s2509_s6 + $0x1c] sm:$0xf] %v1406_v29  ;;  %v1427_v5 = vadd.f32 %v1425_v7, %v1414_v6 }
 0x19c   : > { %v1621_v9 = vpop.permute.xlu2 %1620 }
 0x19e   : > { %v1572_v42 = vpop.permute.xlu1 %1571 }
 0x19f   : > { %v1437_v43 = vpop.permute.xlu0 %1436  ;;  %v1575_v22 = vsel %vm222_vm2, %v1572_v42, %v1574_v32  ;;  %v1654_v32 = vrot.slane %v1650_v25, 2 }
 0x1a0   : > { %v1577_v15 = vadd.f32 %v1575_v22, %v1564_v57  ;;  %v1438_v62 = vsel %vm236_vm3, %v3031_v3, %v1437_v43 }
 0x1a1   : > { %v1440_v36 = vadd.f32 %v1438_v62, %v1427_v5 }
 0x1a3   : > { %v1451_v0 = vadd.f32 %v1449_v31, %v1440_v36 }
 0x1a4   : > { %v1642_v49 = vpop.permute.xlu2 %1641 }
 0x1a6   : > { %v1587_v58 = vpop.permute.xlu1 %1586 }
 0x1a7   : > { %v1585_v46 = vpop.permute.xlu0 %1584 }
 0x1a8   : > { %v1588_v23 = vsel %vm236_vm3, %v1585_v46, %v1587_v58 }
 0x1a9   : > { %v1590_v24 = vadd.f32 %v1588_v23, %v1577_v15 }
 0x1ab   : > { %v1601_v27 = vadd.f32 %v1599_v12, %v1590_v24 }
 0x1ac   : > { %v1528_v17 = vpop.permute.xlu2 %1527 }
 0x1ae   : > { %v1619_v47 = vpop.permute.xlu1 %1618 }
 0x1af   : > { %v1471_v50 = vpop.permute.xlu0 %1470  ;;  %v1622_v3 = vsel %vm222_vm2, %v1619_v47, %v1621_v9  ;;  %v1656_v9 = vsel %vm304_vm1, %v1654_v32, %v1655_v52 }
 0x1b0   : > { %v1472_v44 = vsel %vm222_vm2, %v1469_v63, %v1471_v50  ;;  %v1624_v48 = vadd.f32 %v1622_v3, %v1601_v27  ;;  %v1506_v63 = vsel %vm304_vm1, %v1504_v2, %v1505_v40 }
 0x1b1   : > { %v1474_v41 = vadd.f32 %v1472_v44, %v1451_v0 }
 0x1b4   : > { %v1549_v8 = vpop.permute.xlu2 %1548 }
 0x1b6   : > { %v1494_v39 = vpop.permute.xlu1 %1493 }
 0x1b7   : > { %v1492_v56 = vpop.permute.xlu0 %1491 }
 0x1b8   : > { %v1495_v35 = vsel %vm236_vm3, %v1492_v56, %v1494_v39 }
 0x1b9   : > { %v1497_v58 = vadd.f32 %v1495_v35, %v1474_v41 }
 0x1bb   : > { %v1508_v51 = vadd.f32 %v1506_v63, %v1497_v58 }
 0x1bc   : > { %v1701_v50 = vpop.permute.xlu2 %1700 }
 0x1be   : > { %v1526_v18 = vpop.permute.xlu1 %1525 }
 0x1bf   : > { %v1644_v21 = vpop.permute.xlu0 %1643  ;;  %v1529_v47 = vsel %vm222_vm2, %v1526_v18, %v1528_v17 }
 0x1c0   : > { %v1645_v45 = vsel %vm236_vm3, %v1642_v49, %v1644_v21  ;;  %v1531_v54 = vadd.f32 %v1529_v47, %v1508_v51 }
 0x1c1   : > { %v1647_v43 = vadd.f32 %v1645_v45, %v1624_v48 }
 0x1c3   : > { %v1658_v49 = vadd.f32 %v1656_v9, %v1647_v43 }
 0x1c6   : > { %v1678_v29 = vpop.permute.xlu1 %1677 }
 0x1c7   : > { %v1676_v42 = vpop.permute.xlu0 %1675 }
 0x1c8   : > { %v1679_v46 = vsel %vm222_vm2, %v1676_v42, %v1678_v29 }
 0x1c9   : > { %v1681_v33 = vadd.f32 %v1679_v46, %v1658_v49 }
 0x1ce   : > { %v1699_v53 = vpop.permute.xlu1 %1698 }
 0x1cf   : > { %v1702_v55 = vsel %vm236_vm3, %v1699_v53, %v1701_v50  ;;  %v1551_v39 = vpop.permute.xlu0 %1550 }
 0x1d0   : > { %v1704_v16 = vadd.f32 %v1702_v55, %v1681_v33  ;;  %v1552_v61 = vsel %vm236_vm3, %v1549_v8, %v1551_v39 }
 0x1d1   : > { %v1554_v56 = vadd.f32 %v1552_v61, %v1531_v54 }
 0x1d2   : > { %v1705_v19 = vmax.f32 %v1704_v16, 0.0 }
 0x1d3   : > { %v1555_v17 = vmax.f32 %v1554_v56, 0.0 }
 0x1d4   : > { %v1706_v11 = vpack.c.bf16 %v1705_v19, %v1705_v19 }
 0x1d5   : > { %v1556_v30 = vpack.c.bf16 %v1555_v17, %v1555_v17 }
 0x1d6   : > { %1925 = vst [vmem:[%s2509_s6 + $0x24] sm:$0xf] %v1706_v11 }
 0x1d7   : > { %1914 = vst [vmem:[%s2509_s6 + $0x20] sm:$0xf] %v1556_v30 }
 0x1d8   : > { %2068 = shalt.err (!%p2065_p8)
}
 0x1d9   : > { %s2117_s27 = smov 64   ;;  %s2118_s6 = smov 4  }
 0x1da   : > { %1940 = dma.vmem_to_hbm [thread:$0]  (%p2177_p5), %s1723_s16, 640, %s1725_s20, %s1710_s28, %s2117_s27, %s2117_s27, %s2118_s6  }
 0x1db PF: > { %p1957_p9 = scmp.ge.s32.totalorder %s2111_s15, 2  ;;  %s1739_s10 = sand.u32 1, %s2099_s12  }
 0x1dc   : > { %s1740_s11 = scalar_lea.sflag [#allocation3], %s1739_s10 }
 0x1dd   : > { %p1950_p10 = pnand %p1957_p9, %p2181_p6 }
 0x1df   : > { %p1951_p11 = pneg %p1950_p10 }
 0x1e1   : > { %2094 = dma.done.wait (%p1951_p11), %s1740_s11, 640  }
 0x1e2   : > { %2096 = vsyncadd (%p1951_p11), %s1740_s11, 4294966656  ;;  %p15_p12 = scmp.ge.s32.totalorder %s2164_s18, 4   ;;  %s3112_s12 = smov %s2103_s13 }
 0x1e3   : > { %s3113_s13 = smov %s2107_s14  ;;  %s3114_s14 = smov %s2175_s21 }
 0x1e4   : > { %s3115_s15 = smov %s2164_s18  ;;  %17 = sbr.rel (!%p15_p12) target bundleno = 5 (0x5), region = 85 }
 0x1e9   :  { %1746 = vsyncpa [#allocation3], 1 }
 0x1ea   :  { %1748 = vsyncpa [#allocation3 + $0x1], 1 }
 0x1eb   :  { %1749 = vsyncpa [#allocation4], 1 }
 0x1ec   :  { %1751 = vsyncpa [#allocation4 + $0x1], 1 }
 0x1ed   :  { %1752 = vsyncpa [#allocation6], 1 }

</bundles_post_ra>
